<compile_context>
chip_gen: v7x
topology: tpu7x:2x2x1
jax: 0.10.0
libtpu: 0.0.40
codegen_flags: <defaults>
</compile_context>

<pallas_src>
import functools
import math

import jax
import jax.numpy as jnp
import numpy as np
from jax.experimental import pallas as pl
from jax.experimental.pallas import tpu as pltpu


# ---------------------------------------------------------------------------
# Kernel
# ---------------------------------------------------------------------------

def _upsample_conv_kernel(x_ref, top_ref, bot_ref, w_ref, b_ref, o_ref, *,
                          use_9tap):
    """One (batch n, H-tile i) step of nearest-2x upsample -> 3x3 same conv.

    x_ref:   (1, tile_h, W, C)  input rows [i*tile_h, i*tile_h + tile_h)
    top_ref: (1, 1, W, C)       input row  i*tile_h - 1       (clamped; zeroed at i == 0)
    bot_ref: (1, 1, W, C)       input row  i*tile_h + tile_h  (clamped; zeroed at last i)
    w_ref:   (9C, 4C) if use_9tap else (4, 4C, C)   phase-packed conv weights
    b_ref:   (1, 4C)  float32 bias tiled over the 4 phases
    o_ref:   (1, tile_h, 2, W, 2C) with o[0, h, ph, w, pw*C + c] = y[2h+ph, 2w+pw, c]
    """
    tile_h, W, C = x_ref.shape[1], x_ref.shape[2], x_ref.shape[3]
    dt = x_ref.dtype

    i = pl.program_id(1)
    last = pl.num_programs(1) - 1

    # Row halos; zero them at the image border (replaces a wrapper-side jnp.pad).
    top = top_ref[0] * (i > 0).astype(dt)                          # (1, W, C)
    bot = bot_ref[0] * (i < last).astype(dt)                       # (1, W, C)
    xw = jnp.concatenate([top, x_ref[0], bot], axis=0)             # (tile_h+2, W, C)

    # Column-shifted views (x columns w-1 / w / w+1) with a zero border,
    # built ONCE and shared by all taps; row windows below are outer-dim slices.
    zcol = jnp.zeros((tile_h + 2, 1, C), dt)
    cols = (jnp.concatenate([zcol, xw[:, :W - 1, :]], axis=1),     # col w-1
            xw,                                                    # col w
            jnp.concatenate([xw[:, 1:, :], zcol], axis=1))         # col w+1

    bias = b_ref[...].astype(jnp.float32)                          # (1, 4C)

    if use_9tap:
        # Single matmul with N = 4C output columns (best MXU fill for small C).
        xt = jnp.concatenate(
            [cols[dw][dh:dh + tile_h] for dh in range(3) for dw in range(3)],
            axis=-1)                                               # (tile_h, W, 9C)
        acc = jax.lax.dot_general(
            xt.reshape(tile_h * W, 9 * C), w_ref[...],
            dimension_numbers=(((1,), (0,)), ((), ())),
            preferred_element_type=jnp.float32)                    # (M, 4C)
        acc = acc + bias
        for ph in range(2):                                        # direct stores
            o_ref[0, :, ph, :, :] = (
                acc[:, 2 * ph * C:2 * (ph + 1) * C]
                .reshape(tile_h, W, 2 * C).astype(o_ref.dtype))
    else:
        # Phase-decomposed (16*C^2 MACs/pixel). Two accumulating K=2C matmuls per
        # phase avoid any 4C tap concat; bias is folded into the acc init (hoisted).
        bias_c = jnp.broadcast_to(bias[:, :C], (tile_h * W, C))    # one broadcast
        pairs = [jnp.concatenate([cols[pw], cols[pw + 1]], axis=-1)
                 for pw in range(2)]                               # 2 x (tile_h+2, W, 2C)
        for ph in range(2):
            for pw in range(2):
                p = 2 * ph + pw
                acc = bias_c
                for a in range(2):                                 # row-window slices
                    lhs = pairs[pw][ph + a:ph + a + tile_h]        # (tile_h, W, 2C)
                    acc = acc + jax.lax.dot_general(
                        lhs.reshape(tile_h * W, 2 * C),
                        w_ref[p, 2 * a * C:2 * (a + 1) * C, :],
                        dimension_numbers=(((1,), (0,)), ((), ())),
                        preferred_element_type=jnp.float32)        # (M, C)
                o_ref[0, :, ph, :, pw * C:(pw + 1) * C] = (
                    acc.reshape(tile_h, W, C).astype(o_ref.dtype))


# ---------------------------------------------------------------------------
# Weight packing (trace-time, tiny)
# ---------------------------------------------------------------------------

# sel9[parity, window_row a, kernel_row kh] = 1 iff, for output-row parity `parity`,
# kernel tap kh of the 3x3 conv reads input window row a (nearest upsample folds
# duplicated rows together, hence rows can sum).
_SEL9 = np.zeros((2, 3, 3), np.float32)
_SEL9[0, 0, 0] = _SEL9[0, 1, 1] = _SEL9[0, 1, 2] = 1.0
_SEL9[1, 1, 0] = _SEL9[1, 1, 1] = _SEL9[1, 2, 2] = 1.0


def _pack_weights(weight_oihw, use_9tap):
    """(Cout, Cin, 3, 3) OIHW -> (9Cin, 4Cout) or (4, 4Cin, Cout) phase-packed."""
    cout, cin = weight_oihw.shape[0], weight_oihw.shape[1]
    w_hwio = jnp.transpose(weight_oihw, (2, 3, 1, 0)).astype(jnp.float32)
    sel9 = jnp.asarray(_SEL9)
    # w9[a, b, ci, ph, pw, co]
    w9 = jnp.einsum('pak,qbl,klcd->abcpqd', sel9, sel9, w_hwio)
    if use_9tap:
        packed = w9.reshape(9 * cin, 4 * cout)          # k=(3a+b)Ci+ci, n=(2ph+pw)Co+co
    else:
        mats = []
        for ph in range(2):
            for pw in range(2):
                blk = w9[ph:ph + 2, pw:pw + 2, :, ph, pw, :]   # (2, 2, Cin, Cout)
                mats.append(blk.reshape(4 * cin, cout))        # k=(2a'+b')Ci+ci
        packed = jnp.stack(mats, axis=0)                        # (4, 4Cin, Cout)
    return packed.astype(weight_oihw.dtype)


# ---------------------------------------------------------------------------
# VMEM-aware tiling
# ---------------------------------------------------------------------------

def _vmem_budget():
    """Returns (vmem_limit_bytes to request, per-step footprint budget)."""
    try:
        cap = int(pltpu.get_tpu_info().vmem_capacity_bytes)   # 64 MiB/TC v7x, 128 MiB v5e/v6e
    except Exception:
        cap = 64 * 1024 * 1024                                # conservative fallback
    limit = min(int(cap * 0.75), 100 * 1024 * 1024)
    return limit, int(limit * 0.6)


def _step_vmem_bytes(th, W, C, isz, use_9tap):
    """Rough per-grid-step footprint: double-buffered I/O + weights + temporaries."""
    io = 2 * (th + 2) * W * C * isz                 # main + halo input blocks (x2 buffers)
    io += 2 * th * 2 * W * 2 * C * isz              # output block (x2 buffers)
    wts = (36 if use_9tap else 16) * C * C * isz * 2 + 4 * C * 4
    tmp = 4 * (th + 2) * W * C * isz                # window + 3 column-shifted copies
    if use_9tap:
        tmp += th * W * 9 * C * isz                 # fused taps
        tmp += th * W * 4 * C * 4                   # f32 accumulator
    else:
        tmp += 2 * (th + 2) * W * 2 * C * isz       # column pairs
        tmp += 2 * th * W * C * 4                   # f32 accumulator + bias broadcast
    return io + wts + int(1.5 * tmp)                # fudge for compiler temporaries


def _select_tile_h(H, W, C, isz, use_9tap, budget):
    best = 2
    for th in range(2, H + 1, 2):
        if H % th == 0 and _step_vmem_bytes(th, W, C, isz, use_9tap) <= budget:
            best = th
    return best


# ---------------------------------------------------------------------------
# Wrapper
# ---------------------------------------------------------------------------

def upsample_forward(x_nchw, weight_oihw, bias, *, tile_h=None, use_9tap=None):
    """Forward pass of `Upsample`: (N, C, H, W) -> (N, C, 2H, 2W)."""
    N, C, H, W = x_nchw.shape
    assert H % 2 == 0, "even H required"
    if use_9tap is None:
        # Phase form has only N = C output columns; below ~128 the 256-wide
        # MXU (v6e/v7x) is underfilled, so prefer the 9-tap form there.
        # TODO(synk): lower this threshold to 64 on v5e (128-wide MXU).
        use_9tap = C < 128

    isz = x_nchw.dtype.itemsize
    vmem_limit, vmem_budget = _vmem_budget()
    if tile_h is None:
        tile_h = _select_tile_h(H, W, C, isz, use_9tap, vmem_budget)
    assert tile_h % 2 == 0 and H % tile_h == 0, (H, tile_h)
    n_tiles = H // tile_h

    x_nhwc = jnp.transpose(x_nchw, (0, 2, 3, 1))          # NCHW -> NHWC (lanes = C)
    w_packed = _pack_weights(weight_oihw, use_9tap)
    b_packed = jnp.tile(bias.astype(jnp.float32), 4).reshape(1, 4 * C)

    mac = (36 if use_9tap else 16) * N * H * W * C * C
    bytes_accessed = ((N * H * W * C + 2 * N * n_tiles * W * C) * isz   # input + halo rereads
                      + N * 2 * H * 2 * W * C * isz                     # output
                      + w_packed.size * w_packed.dtype.itemsize
                      + b_packed.size * 4)

    if use_9tap:
        w_spec = pl.BlockSpec((9 * C, 4 * C), lambda n, i: (0, 0))
    else:
        w_spec = pl.BlockSpec((4, 4 * C, C), lambda n, i: (0, 0, 0))

    kernel = functools.partial(_upsample_conv_kernel, use_9tap=use_9tap)

    out_folded = pl.pallas_call(
        kernel,
        out_shape=jax.ShapeDtypeStruct((N, H, 2, W, 2 * C), x_nchw.dtype),
        grid=(N, n_tiles),
        in_specs=[
            # main rows of this tile
            pl.BlockSpec((1, tile_h, W, C), lambda n, i: (n, i, 0, 0)),
            # 1-row top halo (clamped at the border; zeroed in-kernel)
            pl.BlockSpec((1, 1, W, C),
                         lambda n, i: (n, jnp.maximum(i * tile_h - 1, 0), 0, 0)),
            # 1-row bottom halo (clamped at the border; zeroed in-kernel)
            pl.BlockSpec((1, 1, W, C),
                         lambda n, i: (n, jnp.minimum((i + 1) * tile_h, H - 1), 0, 0)),
            w_spec,
            pl.BlockSpec((1, 4 * C), lambda n, i: (0, 0)),
        ],
        out_specs=pl.BlockSpec((1, tile_h, 2, W, 2 * C),
                               lambda n, i: (n, i, 0, 0, 0)),
        compiler_params=pltpu.CompilerParams(
            dimension_semantics=("parallel", "parallel"),
            vmem_limit_bytes=vmem_limit),
        cost_estimate=pl.CostEstimate(flops=2 * mac, transcendentals=0,
                                      bytes_accessed=int(bytes_accessed)),
    )(x_nhwc, x_nhwc, x_nhwc, w_packed, b_packed)

    # (N, H, 2, W, 2C) -> (N, 2H, 2W, C): contiguous merge, no data-movement transpose.
    out_nhwc = out_folded.reshape(N, 2 * H, 2 * W, C)
    return jnp.transpose(out_nhwc, (0, 3, 1, 2))          # NHWC -> NCHW


# ---------------------------------------------------------------------------
# Reference + test
# ---------------------------------------------------------------------------

def reference_forward(x_nchw, weight_oihw, bias):
    """Pure-JAX reference: nearest 2x upsample + 3x3 same conv (NCHW)."""
    xu = jnp.repeat(jnp.repeat(x_nchw, 2, axis=2), 2, axis=3)
    out = jax.lax.conv_general_dilated(
        xu, weight_oihw, window_strides=(1, 1), padding=((1, 1), (1, 1)),
        dimension_numbers=("NCHW", "OIHW", "NCHW"))
    return out + bias[None, :, None, None]


if __name__ == "__main__":
    N, C, H, W = 2, 4, 16, 16

    key = jax.random.PRNGKey(0)
    kx, kw, kb = jax.random.split(key, 3)

    x = jax.random.normal(kx, (N, C, H, W), dtype=jnp.float32)

    # Deterministic Conv2d(C, C, 3) parameters (PyTorch-style uniform bounds).
    fan_in = C * 3 * 3
    bound = 1.0 / math.sqrt(fan_in)
    weight = jax.random.uniform(kw, (C, C, 3, 3), jnp.float32, -bound, bound)  # OIHW
    bias = jax.random.uniform(kb, (C,), jnp.float32, -bound, bound)

    ref = reference_forward(x, weight, bias)
    fwd = jax.jit(upsample_forward, static_argnames=("tile_h", "use_9tap"))

    # Auto tile / auto formulation (single H tile, border masking on both sides).
    out = jax.block_until_ready(fwd(x, weight, bias))
    assert out.shape == (N, C, 2 * H, 2 * W), out.shape
    np.testing.assert_allclose(np.asarray(out), np.asarray(ref), atol=1e-5, rtol=1e-5)

    # Forced 2-tile grid (exercises the halo path) for BOTH matmul formulations.
    for use_9tap in (True, False):
        out = jax.block_until_ready(fwd(x, weight, bias, tile_h=8, use_9tap=use_9tap))
        assert out.shape == (N, C, 2 * H, 2 * W), out.shape
        np.testing.assert_allclose(np.asarray(out), np.asarray(ref),
                                   atol=1e-5, rtol=1e-5)

    print("KERNEL_OK")
</pallas_src>

<mosaic_0001>
module attributes {stable_mosaic.version = 11 : i64} {
  func.func @_upsample_conv_kernel(%arg0: i32, %arg1: i32, %arg2: memref<1x16x16x4xf32, #tpu.memory_space<vmem>>, %arg3: memref<1x1x16x4xf32, #tpu.memory_space<vmem>>, %arg4: memref<1x1x16x4xf32, #tpu.memory_space<vmem>>, %arg5: memref<36x16xf32, #tpu.memory_space<vmem>>, %arg6: memref<1x16xf32, #tpu.memory_space<vmem>>, %arg7: memref<1x16x2x16x8xf32, #tpu.memory_space<vmem>>) attributes {dimension_semantics = [#tpu.dimension_semantics<parallel>, #tpu.dimension_semantics<parallel>], iteration_bounds = array<i64: 2, 1>, scalar_prefetch = 0 : i64, scratch_operands = 0 : i64, tpu.core_type = #tpu.core_type<tc>, window_params = [{transform_indices = @transform_0, window_bounds = array<i64: 1, 16, 16, 4>}, {transform_indices = @transform_1, window_bounds = array<i64: 1, 1, 16, 4>}, {transform_indices = @transform_2, window_bounds = array<i64: 1, 1, 16, 4>}, {pipeline_mode = #tpu.pipeline_mode<synchronous>, transform_indices = @transform_3, window_bounds = array<i64: 36, 16>}, {pipeline_mode = #tpu.pipeline_mode<synchronous>, transform_indices = @transform_4, window_bounds = array<i64: 1, 16>}, {transform_indices = @transform_5, window_bounds = array<i64: 1, 16, 2, 16, 8>}]} {
    %c0 = arith.constant 0 : index
    %c0_0 = arith.constant 0 : index
    %c0_1 = arith.constant 0 : index
    %c0_2 = arith.constant 0 : index
    %0 = vector.load %arg3[%c0, %c0_0, %c0_1, %c0_2] : memref<1x1x16x4xf32, #tpu.memory_space<vmem>>, vector<1x1x16x4xf32>
    %1 = vector.shape_cast %0 : vector<1x1x16x4xf32> to vector<1x16x4xf32>
    %c0_i32 = arith.constant 0 : i32
    %2 = arith.cmpi sgt, %arg1, %c0_i32 : i32
    %3 = arith.extui %2 : i1 to i32
    %4 = arith.sitofp %3 : i32 to f32
    %5 = vector.broadcast %4 : f32 to vector<1x16x4xf32>
    %6 = arith.mulf %1, %5 : vector<1x16x4xf32>
    %c0_3 = arith.constant 0 : index
    %c0_4 = arith.constant 0 : index
    %c0_5 = arith.constant 0 : index
    %c0_6 = arith.constant 0 : index
    %7 = vector.load %arg4[%c0_3, %c0_4, %c0_5, %c0_6] : memref<1x1x16x4xf32, #tpu.memory_space<vmem>>, vector<1x1x16x4xf32>
    %8 = vector.shape_cast %7 : vector<1x1x16x4xf32> to vector<1x16x4xf32>
    %c0_i32_7 = arith.constant 0 : i32
    %9 = arith.cmpi slt, %arg1, %c0_i32_7 : i32
    %10 = arith.extui %9 : i1 to i32
    %11 = arith.sitofp %10 : i32 to f32
    %12 = vector.broadcast %11 : f32 to vector<1x16x4xf32>
    %13 = arith.mulf %8, %12 : vector<1x16x4xf32>
    %c0_8 = arith.constant 0 : index
    %c0_9 = arith.constant 0 : index
    %c0_10 = arith.constant 0 : index
    %c0_11 = arith.constant 0 : index
    %14 = vector.load %arg2[%c0_8, %c0_9, %c0_10, %c0_11] : memref<1x16x16x4xf32, #tpu.memory_space<vmem>>, vector<1x16x16x4xf32>
    %15 = vector.shape_cast %14 : vector<1x16x16x4xf32> to vector<16x16x4xf32>
    %16 = tpu.concatenate %6, %15, %13 in 0 : vector<1x16x4xf32>, vector<16x16x4xf32>, vector<1x16x4xf32> -> vector<18x16x4xf32>
    %cst = arith.constant 0.000000e+00 : f32
    %17 = vector.broadcast %cst : f32 to vector<18x1x4xf32>
    %18 = vector.extract_strided_slice %16 {offsets = [0, 0, 0], sizes = [18, 15, 4], strides = [1, 1, 1]} : vector<18x16x4xf32> to vector<18x15x4xf32>
    %19 = tpu.concatenate %17, %18 in 1 : vector<18x1x4xf32>, vector<18x15x4xf32> -> vector<18x16x4xf32>
    %20 = vector.extract_strided_slice %16 {offsets = [0, 1, 0], sizes = [18, 15, 4], strides = [1, 1, 1]} : vector<18x16x4xf32> to vector<18x15x4xf32>
    %21 = tpu.concatenate %20, %17 in 1 : vector<18x15x4xf32>, vector<18x1x4xf32> -> vector<18x16x4xf32>
    %c0_12 = arith.constant 0 : index
    %c0_13 = arith.constant 0 : index
    %22 = vector.load %arg6[%c0_12, %c0_13] : memref<1x16xf32, #tpu.memory_space<vmem>>, vector<1x16xf32>
    %23 = vector.extract_strided_slice %19 {offsets = [0, 0, 0], sizes = [16, 16, 4], strides = [1, 1, 1]} : vector<18x16x4xf32> to vector<16x16x4xf32>
    %24 = vector.extract_strided_slice %16 {offsets = [0, 0, 0], sizes = [16, 16, 4], strides = [1, 1, 1]} : vector<18x16x4xf32> to vector<16x16x4xf32>
    %25 = vector.extract_strided_slice %21 {offsets = [0, 0, 0], sizes = [16, 16, 4], strides = [1, 1, 1]} : vector<18x16x4xf32> to vector<16x16x4xf32>
    %26 = vector.extract_strided_slice %19 {offsets = [1, 0, 0], sizes = [16, 16, 4], strides = [1, 1, 1]} : vector<18x16x4xf32> to vector<16x16x4xf32>
    %27 = vector.extract_strided_slice %16 {offsets = [1, 0, 0], sizes = [16, 16, 4], strides = [1, 1, 1]} : vector<18x16x4xf32> to vector<16x16x4xf32>
    %28 = vector.extract_strided_slice %21 {offsets = [1, 0, 0], sizes = [16, 16, 4], strides = [1, 1, 1]} : vector<18x16x4xf32> to vector<16x16x4xf32>
    %29 = vector.extract_strided_slice %19 {offsets = [2, 0, 0], sizes = [16, 16, 4], strides = [1, 1, 1]} : vector<18x16x4xf32> to vector<16x16x4xf32>
    %30 = vector.extract_strided_slice %16 {offsets = [2, 0, 0], sizes = [16, 16, 4], strides = [1, 1, 1]} : vector<18x16x4xf32> to vector<16x16x4xf32>
    %31 = vector.extract_strided_slice %21 {offsets = [2, 0, 0], sizes = [16, 16, 4], strides = [1, 1, 1]} : vector<18x16x4xf32> to vector<16x16x4xf32>
    %32 = tpu.concatenate %23, %24, %25, %26, %27, %28, %29, %30, %31 in 2 : vector<16x16x4xf32>, vector<16x16x4xf32>, vector<16x16x4xf32>, vector<16x16x4xf32>, vector<16x16x4xf32>, vector<16x16x4xf32>, vector<16x16x4xf32>, vector<16x16x4xf32>, vector<16x16x4xf32> -> vector<16x16x36xf32>
    %33 = vector.shape_cast %32 : vector<16x16x36xf32> to vector<256x36xf32>
    %c0_14 = arith.constant 0 : index
    %c0_15 = arith.constant 0 : index
    %34 = vector.load %arg5[%c0_14, %c0_15] : memref<36x16xf32, #tpu.memory_space<vmem>>, vector<36x16xf32>
    %cst_16 = arith.constant dense<0.000000e+00> : vector<256x16xf32>
    %35 = tpu.matmul %33, %34, %cst_16 {dimension_numbers = #tpu.dot_dimension_numbers<[1], [0], [0], [1], [0, 0, 1, 1], [], []>} : vector<256x36xf32>, vector<36x16xf32>, vector<256x16xf32> -> vector<256x16xf32>
    %36 = vector.broadcast %22 : vector<1x16xf32> to vector<256x16xf32>
    %37 = arith.addf %35, %36 : vector<256x16xf32>
    %38 = vector.extract_strided_slice %37 {offsets = [0, 0], sizes = [256, 8], strides = [1, 1]} : vector<256x16xf32> to vector<256x8xf32>
    %39 = vector.shape_cast %38 : vector<256x8xf32> to vector<16x16x8xf32>
    %c0_17 = arith.constant 0 : index
    %c0_18 = arith.constant 0 : index
    %c0_19 = arith.constant 0 : index
    %c0_20 = arith.constant 0 : index
    %c0_21 = arith.constant 0 : index
    %40 = vector.load %arg7[%c0_17, %c0_18, %c0_19, %c0_20, %c0_21] : memref<1x16x2x16x8xf32, #tpu.memory_space<vmem>>, vector<1x16x1x16x8xf32>
    %41 = vector.shape_cast %40 : vector<1x16x1x16x8xf32> to vector<16x16x8xf32>
    %42 = vector.shape_cast %39 : vector<16x16x8xf32> to vector<1x16x1x16x8xf32>
    tpu.vector_store %arg7[%c0_17, %c0_18, %c0_19, %c0_20, %c0_21], %42 {strides = array<i32>} : memref<1x16x2x16x8xf32, #tpu.memory_space<vmem>>, vector<1x16x1x16x8xf32>,
    %43 = vector.extract_strided_slice %37 {offsets = [0, 8], sizes = [256, 8], strides = [1, 1]} : vector<256x16xf32> to vector<256x8xf32>
    %44 = vector.shape_cast %43 : vector<256x8xf32> to vector<16x16x8xf32>
    %c0_22 = arith.constant 0 : index
    %c0_23 = arith.constant 0 : index
    %c1 = arith.constant 1 : index
    %c0_24 = arith.constant 0 : index
    %c0_25 = arith.constant 0 : index
    %45 = vector.load %arg7[%c0_22, %c0_23, %c1, %c0_24, %c0_25] : memref<1x16x2x16x8xf32, #tpu.memory_space<vmem>>, vector<1x16x1x16x8xf32>
    %46 = vector.shape_cast %45 : vector<1x16x1x16x8xf32> to vector<16x16x8xf32>
    %47 = vector.shape_cast %44 : vector<16x16x8xf32> to vector<1x16x1x16x8xf32>
    tpu.vector_store %arg7[%c0_22, %c0_23, %c1, %c0_24, %c0_25], %47 {strides = array<i32>} : memref<1x16x2x16x8xf32, #tpu.memory_space<vmem>>, vector<1x16x1x16x8xf32>,
    return
  }
  func.func @transform_0(%arg0: i32, %arg1: i32) -> (i32, i32, i32, i32) {
    %c0_i32 = arith.constant 0 : i32
    %c0_i32_0 = arith.constant 0 : i32
    %c0_i32_1 = arith.constant 0 : i32
    return %arg0, %arg1, %c0_i32, %c0_i32_0 : i32, i32, i32, i32
  }
  func.func @transform_1(%arg0: i32, %arg1: i32) -> (i32, i32, i32, i32) {
    %c16_i32 = arith.constant 16 : i32
    %0 = arith.muli %arg1, %c16_i32 : i32
    %c1_i32 = arith.constant 1 : i32
    %1 = arith.subi %0, %c1_i32 : i32
    %c0_i32 = arith.constant 0 : i32
    %2 = arith.maxsi %1, %c0_i32 : i32
    %c0_i32_0 = arith.constant 0 : i32
    %c0_i32_1 = arith.constant 0 : i32
    %c0_i32_2 = arith.constant 0 : i32
    return %arg0, %2, %c0_i32_0, %c0_i32_1 : i32, i32, i32, i32
  }
  func.func @transform_2(%arg0: i32, %arg1: i32) -> (i32, i32, i32, i32) {
    %c1_i32 = arith.constant 1 : i32
    %0 = arith.addi %arg1, %c1_i32 : i32
    %c16_i32 = arith.constant 16 : i32
    %1 = arith.muli %0, %c16_i32 : i32
    %c15_i32 = arith.constant 15 : i32
    %2 = arith.minsi %1, %c15_i32 : i32
    %c0_i32 = arith.constant 0 : i32
    %c0_i32_0 = arith.constant 0 : i32
    %c0_i32_1 = arith.constant 0 : i32
    return %arg0, %2, %c0_i32, %c0_i32_0 : i32, i32, i32, i32
  }
  func.func @transform_3(%arg0: i32, %arg1: i32) -> (i32, i32) {
    %c0_i32 = arith.constant 0 : i32
    %c0_i32_0 = arith.constant 0 : i32
    %c0_i32_1 = arith.constant 0 : i32
    return %c0_i32, %c0_i32_0 : i32, i32
  }
  func.func @transform_4(%arg0: i32, %arg1: i32) -> (i32, i32) {
    %c0_i32 = arith.constant 0 : i32
    %c0_i32_0 = arith.constant 0 : i32
    %c0_i32_1 = arith.constant 0 : i32
    return %c0_i32, %c0_i32_0 : i32, i32
  }
  func.func @transform_5(%arg0: i32, %arg1: i32) -> (i32, i32, i32, i32, i32) {
    %c0_i32 = arith.constant 0 : i32
    %c0_i32_0 = arith.constant 0 : i32
    %c0_i32_1 = arith.constant 0 : i32
    %c0_i32_2 = arith.constant 0 : i32
    return %arg0, %arg1, %c0_i32, %c0_i32_0, %c0_i32_1 : i32, i32, i32, i32, i32
  }
}

</mosaic_0001>

<bundles_post_ra>
// kernel: tile.8
= control target key start
LH: loop header
LB: loop body
LE: loop exit
PB: predicated region body
PF: predicated region fallthrough
CT: control target
= control target key end

     0   :  { %s22_s0 = inlined_call_operand.vmem [shape: f32[4], index: 0, kind: input, shape index: {}]   ;;  %s23_s1 = inlined_call_operand.vmem [shape: f32[4,4], index: 1, kind: output, shape index: {}]  }
   0x1   :  { %v4_v0 = vld [vmem:[%s22_s0] ss:$0 sm:$0xff] }
   0x2   :  { %5 = vst [vmem:[%s23_s1] sm:$0xf] %v4_v0 }

// kernel: tile.9
= control target key start
LH: loop header
LB: loop body
LE: loop exit
PB: predicated region body
PF: predicated region fallthrough
CT: control target
= control target key end

     0   :  { %vm7_vm0 = vcmask 31744   ;;  %s37_s8 = smov 4   ;;  %s38_s9 = smov 8   ;;  %vm13_vm1 = vcmask 130144   ;;  %vm19_vm2 = vcmask 97344   ;;  %vm25_vm3 = vcmask 64544   ;;  %s55_s0 = inlined_call_operand.vmem [shape: f32[4,4], index: 0, kind: input, shape index: {}]   ;;  %s56_s1 = inlined_call_operand.vmem [shape: f32[1,16], index: 1, kind: output, shape index: {}]  }
   0x1   :  { %v4_v0 = vld [vmem:[%s55_s0] sm:$0xf]  ;;  %s36_s0 = smov 12  }
   0x2   :  { %5 = vst [vmem:[#allocation1] sm:$0xf] %v4_v0 }
   0x9   :  { %v10_v1 = vld [vmem:[#allocation1 + $0x3] sm:$0x1]   ;;  %v22_v2 = vld [vmem:[#allocation1 + $0x1] sm:$0x1]   ;;  %v6_v3 = vld [vmem:[#allocation1] sm:$0x1]  }
   0xa   :  { %11 = vrot.lane.b32.xlu0 %v10_v1, %s36_s0  ;;  %23 = vrot.lane.b32.xlu1 %v22_v2, %s37_s8  ;;  %v16_v4 = vld [vmem:[#allocation1 + $0x2] sm:$0x1]   ;;  %8 = vst.msk [vmem:[#allocation0] sm:$0x1] %vm7_vm0, %v6_v3  }
   0xe   :  { %17 = vrot.lane.b32.xlu0 %v16_v4, %s38_s9 }
  0x7c   :  { %v12_v5 = vpop.permute.xlu0 %11   ;;  %v24_v6 = vpop.permute.xlu1 %23  }
  0x7d   :  { %14 = vst.msk [vmem:[#allocation0] sm:$0x1] %vm13_vm1, %v12_v5  }
  0x80   :  { %v18_v7 = vpop.permute.xlu0 %17  }
  0x81   :  { %20 = vst.msk [vmem:[#allocation0] sm:$0x1] %vm19_vm2, %v18_v7  }
  0x82   :  { %26 = vst.msk [vmem:[#allocation0] sm:$0x1] %vm25_vm3, %v24_v6  }
  0x89   :  { %v30_v8 = vld [vmem:[#allocation0] sm:$0x1] }
  0x8a   :  { %32 = vst [vmem:[%s56_s1] sm:$0x1] %v30_v8 }

// kernel: upsample_forward.1
= control target key start
LH: loop header
LB: loop body
LE: loop exit
PB: predicated region body
PF: predicated region fallthrough
CT: control target
= control target key end

     0   :  { %s2719_s18 = smov 0   ;;  %s2721_s19 = smov 0   ;;  %s4568_s0 = inlined_call_operand.vmem [shape: f32[2,16,16,4], index: 0, kind: input, shape index: {}, may-alias: {0,1,2}]   ;;  %s4569_s1 = inlined_call_operand.vmem [shape: f32[2,16,16,4], index: 1, kind: input, shape index: {}, may-alias: {0,1,2}]   ;;  %s4570_s2 = inlined_call_operand.vmem [shape: f32[2,16,16,4], index: 2, kind: input, shape index: {}, may-alias: {0,1,2}]   ;;  %s4571_s3 = inlined_call_operand.vmem [shape: f32[36,16], index: 3, kind: input, shape index: {}]   ;;  %s4572_s4 = inlined_call_operand.vmem [shape: f32[1,16], index: 4, kind: input, shape index: {}]   ;;  %s4573_s5 = inlined_call_operand.vmem [shape: f32[2,16,2,16,8], index: 5, kind: output, shape index: {}]  }
   0x1   :  { %s2723_s20 = smov 0  }
   0x2 LB: > { %s27_s21 = sadd.s32 1, %s2674_s19  ;;  %p2415_p0 = scmp.ge.s32.totalorder %s2678_s20, 1  ;;  %s2678_s20 = sphi %s2723_s20, %s15_s20   ;;  %s2674_s19 = sphi %s2721_s19, %s4851_s19   ;;  %s2670_s18 = sphi %s2719_s18, %s4850_s18  }
   0x3   : > { %p29_p1 = scmp.ge.s32.totalorder %s27_s21, 2  ;;  %p273_p2 = scmp.lt.s32.totalorder %s2678_s20, 3 }
   0x5   : > { %s4853_s21 = smov (%p29_p1, %s27_s21), 0  ;;  %p274_p3 = pnand %p2415_p0, %p273_p2 }
   0x7   : > { %277 = sbr.rel (%p274_p3) target bundleno = 1007 (0x3ef), region = 40 }
   0xe   : > { %p338_p4 = scmp.lt.s32.totalorder %s2670_s18, 1  ;;  %s2680_s29 = smov 4   ;;  %vm477_vm0 = vcmask 1040384   ;;  %vm584_vm1 = vcmask 1046528   ;;  %vm1851_vm2 = vcmask 1043456   ;;  %vm1479_vm3 = vcmask 31744  }
   0xf   : > { %s2681_s30 = smov 8   ;;  %s2682_s6 = smov 12   ;;  %vm1512_vm4 = vcmask 64512   ;;  %vm1545_vm5 = vcmask 97280   ;;  %vm1578_vm6 = vcmask 130048   ;;  %vm1611_vm7 = vcmask 162816  }
  0x10   : > { %s4855_s18 = smov (!%p338_p4, %s2670_s18), 1  ;;  %s2683_s7 = smov 16   ;;  %vm1644_vm8 = vcmask 195584   ;;  %vm1677_vm9 = vcmask 228352   ;;  %vm1710_vm10 = vcmask 261120   ;;  %vm1754_vm11 = vcmask 293888  }
  0x11   : > { %s2740_s22 = sshll.u32 %s4855_s18, 8  ;;  %s2684_s8 = smov 20  }
  0x12   : > { %s2746_s25 = scalar_lea.vmem %s4568_s0, %s2740_s22  ;;  %s360_s28 = scalar_lea.vmem %s4569_s1, %s2740_s22 }
  0x13   : > { %v2749_v0 = vld [vmem:[%s2746_s25 + $0x10] sm:$0xff]  ;;  %v2752_v1 = vld [vmem:[%s2746_s25] sm:$0xff]  ;;  %v2765_v4 = vld [vmem:[%s2746_s25 + $0x8] sm:$0xff]  ;;  %s2685_s9 = smov 24   ;;  %s2686_s14 = smov 28  }
  0x14   : > { %684 = vrot.lane.b32.xlu0 %v2749_v0, %s2680_s29  ;;  %680 = vrot.lane.b32.xlu1 %v2752_v1, %s2680_s29  ;;  %v393_v2 = vld [vmem:[%s360_s28] sm:$0xff]  ;;  %v394_v5 = vld [vmem:[%s360_s28 + $0x8] sm:$0xff]  ;;  %v589_v41 = vrot.slane %v2765_v4, 1  ;;  %v588_v42 = vrot.slane %v2752_v1, 1  ;;  %v591_v46 = vrot.slane %v2749_v0, 1  ;;  %s2687_s27 = smov 32  }
  0x15   : > { %v2762_v3 = vmul.f32 0.0, %v393_v2  ;;  %v2771_v6 = vmul.f32 0.0, %v394_v5  ;;  %v2774_v7 = vld [vmem:[%s2746_s25 + $0x18] sm:$0xff]  ;;  %v2781_v8 = vld [vmem:[%s2746_s25 + $0x20] sm:$0xff]  ;;  %v2784_v9 = vld [vmem:[%s2746_s25 + $0x28] sm:$0xff]  ;;  %s2495_s28 = sadd.s32 240, %s2740_s22 }
  0x16   : > { %v2791_v10 = vld [vmem:[%s2746_s25 + $0x30] sm:$0xff]  ;;  %v2794_v11 = vld [vmem:[%s2746_s25 + $0x38] sm:$0xff]  ;;  %v2801_v12 = vld [vmem:[%s2746_s25 + $0x40] sm:$0xff]  ;;  %v2926_v43 = vsel %vm584_vm1, %v589_v41, 0.0  ;;  %v2929_v44 = vsel %vm584_vm1, %v588_v42, %v589_v41  ;;  %v592_v45 = vrot.slane %v2774_v7, 1  ;;  %v595_v49 = vrot.slane %v2784_v9, 1 }
  0x17   : > { %4663 = vst [vmem:[#allocation2_spill] sm:$0xff] %v2762_v3  ;;  %4664 = vst [vmem:[#allocation3_spill] sm:$0xff] %v2791_v10  ;;  %v2804_v13 = vld [vmem:[%s2746_s25 + $0x48] sm:$0xff]  ;;  %v4574_v14 = vrot.slane %v2762_v3, 7  ;;  %v479_v15 = vrot.slane %v2771_v6, 7  ;;  %v2818_v17 = vld [vmem:[%s2746_s25 + $0x50] sm:$0xff] }
  0x18   : > { %676 = vrot.lane.b32.xlu0 %v2762_v3, %s2680_s29  ;;  %682 = vrot.lane.b32.xlu1 %v2765_v4, %s2680_s29  ;;  %4665 = vst [vmem:[#allocation4_spill] sm:$0xff] %v2794_v11  ;;  %v2821_v18 = vld [vmem:[%s2746_s25 + $0x58] sm:$0xff]  ;;  %v2828_v19 = vld [vmem:[%s2746_s25 + $0x60] sm:$0xff]  ;;  %v585_v37 = vrot.slane %v2762_v3, 1  ;;  %v586_v38 = vrot.slane %v2771_v6, 1  ;;  %v2938_v47 = vsel %vm584_vm1, %v592_v45, 0.0  ;;  %v2941_v48 = vsel %vm584_vm1, %v591_v46, %v592_v45 }
  0x19   : > { %v2811_v16 = vsel %vm477_vm0, %v4574_v14, %v479_v15  ;;  %v2831_v20 = vld [vmem:[%s2746_s25 + $0x68] sm:$0xff]  ;;  %v2838_v21 = vld [vmem:[%s2746_s25 + $0x70] sm:$0xff]  ;;  %v2841_v22 = vld [vmem:[%s2746_s25 + $0x78] sm:$0xff]  ;;  %v594_v50 = vrot.slane %v2781_v8, 1  ;;  %v2950_v51 = vsel %vm584_vm1, %v595_v49, 0.0  ;;  %v598_v53 = vrot.slane %v2794_v11, 1 }
  0x1a   : > { %4666 = vst [vmem:[#allocation5_spill] sm:$0xff] %v2811_v16  ;;  %v2848_v23 = vld [vmem:[%s2746_s25 + $0x80] sm:$0xff]  ;;  %v2851_v24 = vld [vmem:[%s2746_s25 + $0x88] sm:$0xff]  ;;  %v2858_v25 = vld [vmem:[%s2746_s25 + $0x90] sm:$0xff]  ;;  %v587_v39 = vsel %vm584_vm1, %v585_v37, %v586_v38  ;;  %v657_v40 = vsel %vm584_vm1, %v586_v38, 0.0  ;;  %v597_v54 = vrot.slane %v2791_v10, 1 }
  0x1b   : > { %v2861_v26 = vld [vmem:[%s2746_s25 + $0x98] sm:$0xff]  ;;  %v2868_v27 = vld [vmem:[%s2746_s25 + $0xa0] sm:$0xff]  ;;  %v2871_v28 = vld [vmem:[%s2746_s25 + $0xa8] sm:$0xff]  ;;  %4672 = vst [vmem:[#allocation11_spill] sm:$0xff] %v2950_v51  ;;  %v2953_v52 = vsel %vm584_vm1, %v594_v50, %v595_v49  ;;  %v2962_v55 = vsel %vm584_vm1, %v598_v53, 0.0  ;;  %v601_v57 = vrot.slane %v2804_v13, 1 }
  0x1c   : > { %678 = vrot.lane.b32.xlu0 %v2771_v6, %s2680_s29  ;;  %686 = vrot.lane.b32.xlu1 %v2774_v7, %s2680_s29  ;;  %4667 = vst [vmem:[#allocation6_spill] sm:$0xff] %v2871_v28  ;;  %v2878_v29 = vld [vmem:[%s2746_s25 + $0xb0] sm:$0xff]  ;;  %v2881_v30 = vld [vmem:[%s2746_s25 + $0xb8] sm:$0xff]  ;;  %4673 = vst [vmem:[#allocation12_spill] sm:$0xff] %v2953_v52  ;;  %v2965_v56 = vsel %vm584_vm1, %v597_v54, %v598_v53  ;;  %v600_v58 = vrot.slane %v2801_v12, 1  ;;  %v604_v61 = vrot.slane %v2821_v18, 1 }
  0x1d   : > { %4668 = vst [vmem:[#allocation7_spill] sm:$0xff] %v2878_v29  ;;  %4669 = vst [vmem:[#allocation8_spill] sm:$0xff] %v2881_v30  ;;  %v2888_v31 = vld [vmem:[%s2746_s25 + $0xc0] sm:$0xff]  ;;  %v2891_v32 = vld [vmem:[%s2746_s25 + $0xc8] sm:$0xff]  ;;  %v2974_v59 = vsel %vm584_vm1, %v601_v57, 0.0  ;;  %v603_v62 = vrot.slane %v2818_v17, 1 }
  0x1e   : > { %4670 = vst [vmem:[#allocation9_spill] sm:$0xff] %v2888_v31  ;;  %4671 = vst [vmem:[#allocation10_spill] sm:$0xff] %v2891_v32  ;;  %v2898_v33 = vld [vmem:[%s2746_s25 + $0xd0] sm:$0xff]  ;;  %v2901_v34 = vld [vmem:[%s2746_s25 + $0xd8] sm:$0xff]  ;;  %v2977_v60 = vsel %vm584_vm1, %v600_v58, %v601_v57  ;;  %v2986_v63 = vsel %vm584_vm1, %v604_v61, 0.0  ;;  %v607_v5 = vrot.slane %v2831_v20, 1 }
  0x1f   : > { %v2908_v35 = vld [vmem:[%s2746_s25 + $0xe0] sm:$0xff]  ;;  %v2911_v36 = vld [vmem:[%s2746_s25 + $0xe8] sm:$0xff]  ;;  %4674 = vst [vmem:[#allocation13_spill] sm:$0xff] %v2962_v55  ;;  %4675 = vst [vmem:[#allocation14_spill] sm:$0xff] %v2965_v56  ;;  %v2989_v2 = vsel %vm584_vm1, %v603_v62, %v604_v61  ;;  %v606_v6 = vrot.slane %v2828_v19, 1  ;;  %v610_v38 = vrot.slane %v2841_v22, 1 }
  0x20   : > { %688 = vrot.lane.b32.xlu0 %v2781_v8, %s2680_s29  ;;  %690 = vrot.lane.b32.xlu1 %v2784_v9, %s2680_s29  ;;  %4676 = vst [vmem:[#allocation15_spill] sm:$0xff] %v2974_v59  ;;  %4677 = vst [vmem:[#allocation16_spill] sm:$0xff] %v2977_v60  ;;  %v2998_v15 = vsel %vm584_vm1, %v607_v5, 0.0  ;;  %v613_v42 = vrot.slane %v2851_v24, 1  ;;  %v612_v45 = vrot.slane %v2848_v23, 1  ;;  %v616_v50 = vrot.slane %v2861_v26, 1 }
  0x21   : > { %4678 = vst [vmem:[#allocation17_spill] sm:$0xff] %v2986_v63  ;;  %4679 = vst [vmem:[#allocation18_spill] sm:$0xff] %v2989_v2  ;;  %v3001_v37 = vsel %vm584_vm1, %v606_v6, %v607_v5  ;;  %v615_v53 = vrot.slane %v2858_v25, 1  ;;  %v619_v58 = vrot.slane %v2871_v28, 1  ;;  %v618_v61 = vrot.slane %v2868_v27, 1  ;;  %s2496_s22 = sshll.u32 %s4855_s18, 9 }
  0x22   : > { %4680 = vst [vmem:[#allocation19_spill] sm:$0xff] %v2998_v15  ;;  %4681 = vst [vmem:[#allocation20_spill] sm:$0xff] %v3001_v37  ;;  %v3022_v46 = vsel %vm584_vm1, %v613_v42, 0.0  ;;  %v3025_v49 = vsel %vm584_vm1, %v612_v45, %v613_v42  ;;  %v3034_v54 = vsel %vm584_vm1, %v616_v50, 0.0  ;;  %v622_v6 = vrot.slane %v2881_v30, 1  ;;  %s4269_s10 = scalar_lea.vmem %s4573_s5, %s2496_s22  ;;  %s2688_s18 = smov 120  }
  0x23   : > { %4684 = vst [vmem:[#allocation23_spill] sm:$0xff] %v3022_v46  ;;  %4685 = vst [vmem:[#allocation24_spill] sm:$0xff] %v3025_v49  ;;  %v3037_v57 = vsel %vm584_vm1, %v615_v53, %v616_v50  ;;  %v3046_v62 = vsel %vm584_vm1, %v619_v58, 0.0  ;;  %v3049_v5 = vsel %vm584_vm1, %v618_v61, %v619_v58  ;;  %v625_v45 = vrot.slane %v2891_v32, 1 }
  0x24   : > { %692 = vrot.lane.b32.xlu0 %v2791_v10, %s2680_s29  ;;  %694 = vrot.lane.b32.xlu1 %v2794_v11, %s2680_s29  ;;  %4686 = vst [vmem:[#allocation25_spill] sm:$0xff] %v3046_v62  ;;  %4687 = vst [vmem:[#allocation26_spill] sm:$0xff] %v3049_v5  ;;  %v624_v50 = vrot.slane %v2888_v31, 1  ;;  %v628_v61 = vrot.slane %v2901_v34, 1 }
  0x25   : > { %v3070_v53 = vsel %vm584_vm1, %v625_v45, 0.0 }
  0x26   : > { %4690 = vst [vmem:[#allocation29_spill] sm:$0xff] %v3070_v53  ;;  %v3073_v58 = vsel %vm584_vm1, %v624_v50, %v625_v45  ;;  %v631_v50 = vrot.slane %v2911_v36, 1 }
  0x27   : > { %4691 = vst [vmem:[#allocation30_spill] sm:$0xff] %v3073_v58 }
  0x28   : > { %696 = vrot.lane.b32.xlu0 %v2801_v12, %s2680_s29  ;;  %698 = vrot.lane.b32.xlu1 %v2804_v13, %s2680_s29 }
  0x2c   : > { %700 = vrot.lane.b32.xlu0 %v2818_v17, %s2680_s29  ;;  %702 = vrot.lane.b32.xlu1 %v2821_v18, %s2680_s29 }
  0x30   : > { %704 = vrot.lane.b32.xlu0 %v2828_v19, %s2680_s29  ;;  %706 = vrot.lane.b32.xlu1 %v2831_v20, %s2680_s29 }
  0x34   : > { %708 = vrot.lane.b32.xlu0 %v2838_v21, %s2680_s29  ;;  %710 = vrot.lane.b32.xlu1 %v2841_v22, %s2680_s29 }
  0x38   : > { %712 = vrot.lane.b32.xlu0 %v2848_v23, %s2680_s29  ;;  %714 = vrot.lane.b32.xlu1 %v2851_v24, %s2680_s29 }
  0x3c   : > { %716 = vrot.lane.b32.xlu0 %v2858_v25, %s2680_s29  ;;  %718 = vrot.lane.b32.xlu1 %v2861_v26, %s2680_s29 }
  0x40   : > { %720 = vrot.lane.b32.xlu0 %v2868_v27, %s2680_s29  ;;  %722 = vrot.lane.b32.xlu1 %v2871_v28, %s2680_s29 }
  0x44   : > { %724 = vrot.lane.b32.xlu0 %v2878_v29, %s2680_s29  ;;  %726 = vrot.lane.b32.xlu1 %v2881_v30, %s2680_s29 }
  0x48   : > { %728 = vrot.lane.b32.xlu0 %v2888_v31, %s2680_s29  ;;  %730 = vrot.lane.b32.xlu1 %v2891_v32, %s2680_s29 }
  0x4c   : > { %732 = vrot.lane.b32.xlu0 %v2898_v33, %s2680_s29  ;;  %734 = vrot.lane.b32.xlu1 %v2901_v34, %s2680_s29 }
  0x50   : > { %736 = vrot.lane.b32.xlu0 %v2908_v35, %s2680_s29  ;;  %738 = vrot.lane.b32.xlu1 %v2911_v36, %s2680_s29 }
  0x54   : > { %788 = vrot.lane.b32.xlu0 %v587_v39, %s2681_s30  ;;  %790 = vrot.lane.b32.xlu1 %v657_v40, %s2681_s30  ;;  %v609_v39 = vrot.slane %v2838_v21, 1  ;;  %v3010_v40 = vsel %vm584_vm1, %v610_v38, 0.0 }
  0x55   : > { %4682 = vst [vmem:[#allocation21_spill] sm:$0xff] %v3010_v40 }
  0x56   : > { %v3013_v41 = vsel %vm584_vm1, %v609_v39, %v610_v38  ;;  %v621_v38 = vrot.slane %v2878_v29, 1  ;;  %v3058_v39 = vsel %vm584_vm1, %v622_v6, 0.0 }
  0x57   : > { %4683 = vst [vmem:[#allocation22_spill] sm:$0xff] %v3013_v41  ;;  %4688 = vst [vmem:[#allocation27_spill] sm:$0xff] %v3058_v39 }
  0x58   : > { %794 = vrot.lane.b32.xlu1 %v2926_v43, %s2681_s30  ;;  %792 = vrot.lane.b32.xlu0 %v2929_v44, %s2681_s30  ;;  %v3061_v42 = vsel %vm584_vm1, %v621_v38, %v622_v6  ;;  %v627_v6 = vrot.slane %v2898_v33, 1 }
  0x59   : > { %4689 = vst [vmem:[#allocation28_spill] sm:$0xff] %v3061_v42 }
  0x5a   : > { %v3089_v45 = vsel %vm584_vm1, %v627_v6, %v628_v61 }
  0x5b   : > { %4694 = vst [vmem:[#allocation33_spill] sm:$0xff] %v3089_v45 }
  0x5c   : > { %798 = vrot.lane.b32.xlu1 %v2938_v47, %s2681_s30  ;;  %796 = vrot.lane.b32.xlu0 %v2941_v48, %s2681_s30 }
  0x60   : > { %802 = vrot.lane.b32.xlu1 %v2950_v51, %s2681_s30  ;;  %800 = vrot.lane.b32.xlu0 %v2953_v52, %s2681_s30  ;;  %v496_v51 = vrot.slane %v2818_v17, 7  ;;  %v499_v17 = vrot.slane %v2828_v19, 7  ;;  %v502_v19 = vrot.slane %v2838_v21, 7  ;;  %v505_v21 = vrot.slane %v2848_v23, 7 }
  0x64   : > { %806 = vrot.lane.b32.xlu1 %v2962_v55, %s2681_s30  ;;  %804 = vrot.lane.b32.xlu0 %v2965_v56, %s2681_s30  ;;  %v493_v55 = vrot.slane %v2801_v12, 7 }
  0x68   : > { %810 = vrot.lane.b32.xlu1 %v2974_v59, %s2681_s30  ;;  %808 = vrot.lane.b32.xlu0 %v2977_v60, %s2681_s30  ;;  %v484_v59 = vrot.slane %v2749_v0, 7  ;;  %v490_v60 = vrot.slane %v2791_v10, 7 }
  0x6a   : > { %v3142_v16 = vsel %vm477_vm0, 0.0, %v484_v59 }
  0x6c   : > { %814 = vrot.lane.b32.xlu1 %v2986_v63, %s2681_s30  ;;  %812 = vrot.lane.b32.xlu0 %v2989_v2, %s2681_s30  ;;  %v482_v63 = vrot.slane %v2765_v4, 7  ;;  %v481_v2 = vrot.slane %v2752_v1, 7 }
  0x70   : > { %818 = vrot.lane.b32.xlu1 %v2998_v15, %s2681_s30  ;;  %816 = vrot.lane.b32.xlu0 %v3001_v37, %s2681_s30 }
  0x74   : > { %822 = vrot.lane.b32.xlu1 %v3010_v40, %s2681_s30  ;;  %820 = vrot.lane.b32.xlu0 %v3013_v41, %s2681_s30  ;;  %v3086_v40 = vsel %vm584_vm1, %v628_v61, 0.0  ;;  %v630_v41 = vrot.slane %v2908_v35, 1  ;;  %v3104_v61 = vsel %vm584_vm1, %v631_v50, 0.0 }
  0x75   : > { %4693 = vst [vmem:[#allocation32_spill] sm:$0xff] %v3086_v40  ;;  %4697 = vst [vmem:[#allocation36_spill] sm:$0xff] %v3104_v61 }
  0x76   : > { %v3107_v6 = vsel %vm584_vm1, %v630_v41, %v631_v50 }
  0x77   : > { %4698 = vst [vmem:[#allocation37_spill] sm:$0xff] %v3107_v6 }
  0x78   : > { %826 = vrot.lane.b32.xlu1 %v3022_v46, %s2681_s30  ;;  %824 = vrot.lane.b32.xlu0 %v3025_v49, %s2681_s30 }
  0x7c   : > { %830 = vrot.lane.b32.xlu1 %v3034_v54, %s2681_s30  ;;  %828 = vrot.lane.b32.xlu0 %v3037_v57, %s2681_s30 }
  0x80   : > { %834 = vrot.lane.b32.xlu1 %v3046_v62, %s2681_s30  ;;  %832 = vrot.lane.b32.xlu0 %v3049_v5, %s2681_s30 }
  0x84   : > { %838 = vrot.lane.b32.xlu1 %v3058_v39, %s2681_s30  ;;  %836 = vrot.lane.b32.xlu0 %v3061_v42, %s2681_s30  ;;  %v497_v42 = vrot.slane %v2821_v18, 7  ;;  %v500_v18 = vrot.slane %v2831_v20, 7  ;;  %v503_v20 = vrot.slane %v2841_v22, 7  ;;  %v506_v22 = vrot.slane %v2851_v24, 7 }
  0x86   : > { %v3077_v38 = vpop.permute.xlu0 %684  ;;  %v3079_v14 = vpop.permute.xlu1 %680 }
  0x87   : > { %4692 = vst [vmem:[#allocation31_spill] sm:$0xff] %v3079_v14 }
  0x88   : > { %842 = vrot.lane.b32.xlu1 %v3070_v53, %s2681_s30  ;;  %840 = vrot.lane.b32.xlu0 %v3073_v58, %s2681_s30 }
  0x8a   : > { %v3093_v15 = vpop.permute.xlu0 %676  ;;  %v3095_v37 = vpop.permute.xlu1 %682 }
  0x8b   : > { %4695 = vst [vmem:[#allocation34_spill] sm:$0xff] %v3093_v15  ;;  %4696 = vst [vmem:[#allocation35_spill] sm:$0xff] %v3095_v37  ;;  %v3121_v37 = vsel %vm477_vm0, %v481_v2, %v482_v63  ;;  %v488_v63 = vrot.slane %v2784_v9, 7  ;;  %v494_v15 = vrot.slane %v2804_v13, 7 }
  0x8c   : > { %846 = vrot.lane.b32.xlu1 %v3086_v40, %s2681_s30  ;;  %844 = vrot.lane.b32.xlu0 %v3089_v45, %s2681_s30  ;;  %v3118_v40 = vsel %vm477_vm0, 0.0, %v481_v2  ;;  %4701 = vst [vmem:[#allocation40_spill] sm:$0xff] %v3121_v37  ;;  %v485_v45 = vrot.slane %v2774_v7, 7 }
  0x8d   : > { %4700 = vst [vmem:[#allocation39_spill] sm:$0xff] %v3118_v40 }
  0x8e   : > { %v3109_v14 = vpop.permute.xlu0 %678  ;;  %v3111_v53 = vpop.permute.xlu1 %686 }
  0x8f   : > { %4699 = vst [vmem:[#allocation38_spill] sm:$0xff] %v3109_v14  ;;  %v487_v14 = vrot.slane %v2781_v8, 7 }
  0x90   : > { %850 = vrot.lane.b32.xlu1 %v3104_v61, %s2681_s30  ;;  %848 = vrot.lane.b32.xlu0 %v3107_v6, %s2681_s30  ;;  %v3134_v61 = vsel %vm477_vm0, %v484_v59, %v485_v45 }
  0x91   : > { %v3150_v45 = vsel %vm477_vm0, %v487_v14, %v488_v63  ;;  %v3158_v59 = vsel %vm477_vm0, 0.0, %v487_v14  ;;  %v3174_v14 = vsel %vm477_vm0, 0.0, %v490_v60 }
  0x92   : > { %v3124_v41 = vpop.permute.xlu0 %688  ;;  %v3126_v50 = vpop.permute.xlu1 %690 }
  0x94   : > { %900 = vrot.lane.b32.xlu0 %v3118_v40, %s2682_s6  ;;  %902 = vrot.lane.b32.xlu1 %v3121_v37, %s2682_s6  ;;  %v491_v37 = vrot.slane %v2794_v11, 7 }
  0x96   : > { %v3137_v2 = vpop.permute.xlu0 %692  ;;  %v3139_v6 = vpop.permute.xlu1 %694  ;;  %v3166_v63 = vsel %vm477_vm0, %v490_v60, %v491_v37  ;;  %v3182_v37 = vsel %vm477_vm0, %v493_v55, %v494_v15  ;;  %v3190_v60 = vsel %vm477_vm0, 0.0, %v493_v55  ;;  %v3198_v15 = vsel %vm477_vm0, %v496_v51, %v497_v42 }
  0x97   : > { %v3206_v55 = vsel %vm477_vm0, 0.0, %v496_v51  ;;  %v3214_v42 = vsel %vm477_vm0, %v499_v17, %v500_v18  ;;  %v3222_v51 = vsel %vm477_vm0, 0.0, %v499_v17  ;;  %v3230_v18 = vsel %vm477_vm0, %v502_v19, %v503_v20 }
  0x98   : > { %904 = vrot.lane.b32.xlu0 %v3142_v16, %s2682_s6  ;;  %906 = vrot.lane.b32.xlu1 %v3134_v61, %s2682_s6  ;;  %4705 = vst [vmem:[#allocation44_spill] sm:$0xff] %v3214_v42  ;;  %4708 = vst [vmem:[#allocation47_spill] sm:$0xff] %v3230_v18  ;;  %v3238_v17 = vsel %vm477_vm0, 0.0, %v502_v19  ;;  %v3246_v20 = vsel %vm477_vm0, %v505_v21, %v506_v22  ;;  %v3254_v19 = vsel %vm477_vm0, 0.0, %v505_v21 }
  0x99   : > { %4711 = vst [vmem:[#allocation50_spill] sm:$0xff] %v3238_v17  ;;  %4712 = vst [vmem:[#allocation51_spill] sm:$0xff] %v3246_v20 }
  0x9a   : > { %v3153_v40 = vpop.permute.xlu0 %696  ;;  %v3155_v58 = vpop.permute.xlu1 %698  ;;  %4715 = vst [vmem:[#allocation54_spill] sm:$0xff] %v3254_v19 }
  0x9c   : > { %908 = vrot.lane.b32.xlu0 %v3158_v59, %s2682_s6  ;;  %910 = vrot.lane.b32.xlu1 %v3150_v45, %s2682_s6 }
  0x9e   : > { %v3169_v3 = vpop.permute.xlu0 %700  ;;  %v3171_v39 = vpop.permute.xlu1 %702 }
  0xa0   : > { %912 = vrot.lane.b32.xlu0 %v3174_v14, %s2682_s6  ;;  %914 = vrot.lane.b32.xlu1 %v3166_v63, %s2682_s6 }
  0xa2   : > { %v3185_v56 = vpop.permute.xlu0 %704  ;;  %v3187_v62 = vpop.permute.xlu1 %706 }
  0xa3   : > { %4702 = vst [vmem:[#allocation41_spill] sm:$0xff] %v3187_v62 }
  0xa4   : > { %916 = vrot.lane.b32.xlu0 %v3190_v60, %s2682_s6  ;;  %918 = vrot.lane.b32.xlu1 %v3182_v37, %s2682_s6 }
  0xa6   : > { %v3201_v5 = vpop.permute.xlu0 %708  ;;  %v3203_v52 = vpop.permute.xlu1 %710 }
  0xa7   : > { %4703 = vst [vmem:[#allocation42_spill] sm:$0xff] %v3201_v5  ;;  %4704 = vst [vmem:[#allocation43_spill] sm:$0xff] %v3203_v52 }
  0xa8   : > { %920 = vrot.lane.b32.xlu0 %v3206_v55, %s2682_s6  ;;  %922 = vrot.lane.b32.xlu1 %v3198_v15, %s2682_s6 }
  0xaa   : > { %v3217_v62 = vpop.permute.xlu0 %712  ;;  %v3219_v5 = vpop.permute.xlu1 %714 }
  0xab   : > { %4706 = vst [vmem:[#allocation45_spill] sm:$0xff] %v3217_v62  ;;  %4707 = vst [vmem:[#allocation46_spill] sm:$0xff] %v3219_v5  ;;  %v509_v5 = vrot.slane %v2861_v26, 7 }
  0xac   : > { %924 = vrot.lane.b32.xlu0 %v3222_v51, %s2682_s6  ;;  %926 = vrot.lane.b32.xlu1 %v3214_v42, %s2682_s6 }
  0xae   : > { %v3233_v52 = vpop.permute.xlu0 %716  ;;  %v3235_v62 = vpop.permute.xlu1 %718 }
  0xaf   : > { %4709 = vst [vmem:[#allocation48_spill] sm:$0xff] %v3233_v52  ;;  %4710 = vst [vmem:[#allocation49_spill] sm:$0xff] %v3235_v62  ;;  %v508_v62 = vrot.slane %v2858_v25, 7 }
  0xb0   : > { %928 = vrot.lane.b32.xlu0 %v3238_v17, %s2682_s6  ;;  %930 = vrot.lane.b32.xlu1 %v3230_v18, %s2682_s6  ;;  %v512_v18 = vrot.slane %v2871_v28, 7 }
  0xb1   : > { %v3262_v22 = vsel %vm477_vm0, %v508_v62, %v509_v5  ;;  %v3270_v21 = vsel %vm477_vm0, 0.0, %v508_v62 }
  0xb2   : > { %v3249_v42 = vpop.permute.xlu0 %720  ;;  %v3251_v52 = vpop.permute.xlu1 %722 }
  0xb3   : > { %4713 = vst [vmem:[#allocation52_spill] sm:$0xff] %v3249_v42  ;;  %4714 = vst [vmem:[#allocation53_spill] sm:$0xff] %v3251_v52  ;;  %v511_v52 = vrot.slane %v2868_v27, 7 }
  0xb4   : > { %932 = vrot.lane.b32.xlu0 %v3254_v19, %s2682_s6  ;;  %934 = vrot.lane.b32.xlu1 %v3246_v20, %s2682_s6  ;;  %v515_v20 = vrot.slane %v2881_v30, 7  ;;  %v518_v30 = vrot.slane %v2891_v32, 7  ;;  %v521_v32 = vrot.slane %v2901_v34, 7  ;;  %v524_v34 = vrot.slane %v2911_v36, 7 }
  0xb5   : > { %v3278_v5 = vsel %vm477_vm0, %v511_v52, %v512_v18  ;;  %v3286_v62 = vsel %vm477_vm0, 0.0, %v511_v52 }
  0xb6   : > { %v3265_v17 = vpop.permute.xlu0 %724  ;;  %v3267_v42 = vpop.permute.xlu1 %726 }
  0xb7   : > { %4716 = vst [vmem:[#allocation55_spill] sm:$0xff] %v3265_v17  ;;  %4717 = vst [vmem:[#allocation56_spill] sm:$0xff] %v3267_v42  ;;  %v514_v42 = vrot.slane %v2878_v29, 7  ;;  %v517_v29 = vrot.slane %v2888_v31, 7  ;;  %v520_v31 = vrot.slane %v2898_v33, 7 }
  0xb8   : > { %936 = vrot.lane.b32.xlu0 %v3270_v21, %s2682_s6  ;;  %938 = vrot.lane.b32.xlu1 %v3262_v22, %s2682_s6 }
  0xb9   : > { %v3294_v18 = vsel %vm477_vm0, %v514_v42, %v515_v20  ;;  %v3302_v52 = vsel %vm477_vm0, 0.0, %v514_v42  ;;  %v3310_v20 = vsel %vm477_vm0, %v517_v29, %v518_v30  ;;  %v3318_v42 = vsel %vm477_vm0, 0.0, %v517_v29  ;;  %v3337_v29 = vld [vmem:[%s2746_s25 + $0xf8] sm:$0xff] }
  0xba   : > { %v3281_v19 = vpop.permute.xlu0 %728  ;;  %v3283_v17 = vpop.permute.xlu1 %730  ;;  %4722 = vst [vmem:[#allocation61_spill] sm:$0xff] %v3310_v20  ;;  %4725 = vst [vmem:[#allocation64_spill] sm:$0xff] %v3318_v42  ;;  %v3326_v30 = vsel %vm477_vm0, %v520_v31, %v521_v32  ;;  %v3340_v33 = vsel %vm477_vm0, 0.0, %v520_v31 }
  0xbb   : > { %4718 = vst [vmem:[#allocation57_spill] sm:$0xff] %v3281_v19  ;;  %4719 = vst [vmem:[#allocation58_spill] sm:$0xff] %v3283_v17 }
  0xbc   : > { %940 = vrot.lane.b32.xlu0 %v3286_v62, %s2682_s6  ;;  %942 = vrot.lane.b32.xlu1 %v3278_v5, %s2682_s6  ;;  %4726 = vst [vmem:[#allocation65_spill] sm:$0xff] %v3326_v30  ;;  %4730 = vst [vmem:[#allocation69_spill] sm:$0xff] %v3337_v29 }
  0xbd   : > { %4731 = vst [vmem:[#allocation70_spill] sm:$0xff] %v3340_v33 }
  0xbe   : > { %v3297_v28 = vpop.permute.xlu0 %732  ;;  %v3299_v19 = vpop.permute.xlu1 %734 }
  0xbf   : > { %4720 = vst [vmem:[#allocation59_spill] sm:$0xff] %v3297_v28  ;;  %4721 = vst [vmem:[#allocation60_spill] sm:$0xff] %v3299_v19 }
  0xc0   : > { %944 = vrot.lane.b32.xlu0 %v3302_v52, %s2682_s6  ;;  %946 = vrot.lane.b32.xlu1 %v3294_v18, %s2682_s6 }
  0xc2   : > { %v3313_v28 = vpop.permute.xlu0 %736  ;;  %v3315_v19 = vpop.permute.xlu1 %738 }
  0xc3   : > { %4723 = vst [vmem:[#allocation62_spill] sm:$0xff] %v3313_v28  ;;  %4724 = vst [vmem:[#allocation63_spill] sm:$0xff] %v3315_v19  ;;  %v3334_v19 = vld [vmem:[%s2746_s25 + $0xf0] sm:$0xff] }
  0xc4   : > { %948 = vrot.lane.b32.xlu0 %v3318_v42, %s2682_s6  ;;  %950 = vrot.lane.b32.xlu1 %v3310_v20, %s2682_s6  ;;  %4729 = vst [vmem:[#allocation68_spill] sm:$0xff] %v3334_v19  ;;  %v523_v42 = vrot.slane %v2908_v35, 7  ;;  %v526_v36 = vrot.slane %v3334_v19, 7 }
  0xc6   : > { %v3329_v17 = vpop.permute.xlu0 %788  ;;  %v3331_v28 = vpop.permute.xlu1 %790  ;;  %v3348_v32 = vsel %vm477_vm0, %v523_v42, %v524_v34  ;;  %v3357_v31 = vsel %vm477_vm0, 0.0, %v523_v42  ;;  %v3364_v35 = vsel %vm477_vm0, 0.0, %v526_v36 }
  0xc7   : > { %4727 = vst [vmem:[#allocation66_spill] sm:$0xff] %v3329_v17  ;;  %4728 = vst [vmem:[#allocation67_spill] sm:$0xff] %v3331_v28  ;;  %v527_v28 = vrot.slane %v3337_v29, 7 }
  0xc8   : > { %952 = vrot.lane.b32.xlu0 %v3340_v33, %s2682_s6  ;;  %954 = vrot.lane.b32.xlu1 %v3326_v30, %s2682_s6  ;;  %4732 = vst [vmem:[#allocation71_spill] sm:$0xff] %v3348_v32  ;;  %4735 = vst [vmem:[#allocation74_spill] sm:$0xff] %v3357_v31 }
  0xc9   : > { %4736 = vst [vmem:[#allocation75_spill] sm:$0xff] %v3364_v35  ;;  %v3367_v34 = vsel %vm477_vm0, %v526_v36, %v527_v28 }
  0xca   : > { %v3352_v17 = vpop.permute.xlu1 %794  ;;  %v3354_v20 = vpop.permute.xlu0 %792  ;;  %4737 = vst [vmem:[#allocation76_spill] sm:$0xff] %v3367_v34 }
  0xcb   : > { %4733 = vst [vmem:[#allocation72_spill] sm:$0xff] %v3352_v17  ;;  %4734 = vst [vmem:[#allocation73_spill] sm:$0xff] %v3354_v20 }
  0xcc   : > { %956 = vrot.lane.b32.xlu0 %v3357_v31, %s2682_s6  ;;  %958 = vrot.lane.b32.xlu1 %v3348_v32, %s2682_s6 }
  0xce   : > { %v3369_v29 = vpop.permute.xlu1 %798  ;;  %v3371_v19 = vpop.permute.xlu0 %796 }
  0xd0   : > { %960 = vrot.lane.b32.xlu0 %v3364_v35, %s2682_s6  ;;  %962 = vrot.lane.b32.xlu1 %v3367_v34, %s2682_s6  ;;  %s377_s6 = scalar_lea.vmem %s4570_s2, %s2495_s28 }
  0xd2   : > { %v3377_v42 = vpop.permute.xlu1 %802  ;;  %v3379_v17 = vpop.permute.xlu0 %800 }
  0xd4   : > { %996 = vrot.lane.b32.xlu0 %v2752_v1, %s2683_s7  ;;  %998 = vrot.lane.b32.xlu1 %v2765_v4, %s2683_s7 }
  0xd6   : > { %v3385_v28 = vpop.permute.xlu1 %806  ;;  %v3387_v36 = vpop.permute.xlu0 %804 }
  0xd8   : > { %1000 = vrot.lane.b32.xlu0 %v2749_v0, %s2683_s7  ;;  %1002 = vrot.lane.b32.xlu1 %v2774_v7, %s2683_s7 }
  0xda   : > { %v3393_v34 = vpop.permute.xlu1 %810  ;;  %v3395_v35 = vpop.permute.xlu0 %808 }
  0xdc   : > { %1004 = vrot.lane.b32.xlu0 %v2781_v8, %s2683_s7  ;;  %1006 = vrot.lane.b32.xlu1 %v2784_v9, %s2683_s7 }
  0xde   : > { %v3401_v1 = vpop.permute.xlu1 %814  ;;  %v3403_v4 = vpop.permute.xlu0 %812 }
  0xe0   : > { %1008 = vrot.lane.b32.xlu0 %v2791_v10, %s2683_s7  ;;  %1010 = vrot.lane.b32.xlu1 %v2794_v11, %s2683_s7 }
  0xe2   : > { %v3409_v20 = vpop.permute.xlu1 %818  ;;  %v3411_v32 = vpop.permute.xlu0 %816 }
  0xe4   : > { %1012 = vrot.lane.b32.xlu0 %v2801_v12, %s2683_s7  ;;  %1014 = vrot.lane.b32.xlu1 %v2804_v13, %s2683_s7 }
  0xe6   : > { %v3417_v31 = vpop.permute.xlu1 %822  ;;  %v3419_v30 = vpop.permute.xlu0 %820 }
  0xe7   : > { %4738 = vst [vmem:[#allocation77_spill] sm:$0xff] %v3417_v31  ;;  %4739 = vst [vmem:[#allocation78_spill] sm:$0xff] %v3419_v30  ;;  %v1745_v30 = vld [vmem:[%s4571_s3 + $0x10] sm:$0xff] }
  0xe8   : > { %1028 = vrot.lane.b32.xlu0 %v2848_v23, %s2683_s7  ;;  %1030 = vrot.lane.b32.xlu1 %v2851_v24, %s2683_s7 }
  0xea   : > { %v3425_v11 = vpop.permute.xlu1 %826  ;;  %v3427_v10 = vpop.permute.xlu0 %824 }
  0xeb   : > { %4740 = vst [vmem:[#allocation79_spill] sm:$0xff] %v3425_v11  ;;  %4741 = vst [vmem:[#allocation80_spill] sm:$0xff] %v3427_v10 }
  0xec   : > { %1093 = vrot.lane.b32.xlu0 %v2929_v44, %s2684_s8  ;;  %1125 = vrot.lane.b32.xlu1 %v3025_v49, %s2684_s8 }
  0xee   : > { %v3433_v12 = vpop.permute.xlu1 %830  ;;  %v3435_v13 = vpop.permute.xlu0 %828 }
  0xf0   : > { %1095 = vrot.lane.b32.xlu0 %v2926_v43, %s2684_s8  ;;  %1127 = vrot.lane.b32.xlu1 %v3022_v46, %s2684_s8  ;;  %v1743_v43 = vld [vmem:[%s4571_s3] sm:$0xff]  ;;  %v1744_v46 = vld [vmem:[%s4571_s3 + $0x8] sm:$0xff] }
  0xf1   : > { %v2593_v11 = vpack.c.bf16 %v1744_v46, %v1743_v43  ;;  %v1746_v46 = vld [vmem:[%s4571_s3 + $0x18] sm:$0xff] }
  0xf2   : > { %v3441_v23 = vpop.permute.xlu1 %834  ;;  %v3443_v24 = vpop.permute.xlu0 %832  ;;  %v2597_v43 = vpack.c.bf16 %v1746_v46, %v1745_v30 }
  0xf3   : > { %2594 = vmatprep.subr.bf16.mxu0 %v2593_v11  ;;  %2601 = vmatprep.subr.bf16.mxu1 %v2593_v11 }
  0xf4   : > { %1190 = vrot.lane.b32.xlu0 %v3142_v16, %s2685_s9  ;;  %1222 = vrot.lane.b32.xlu1 %v3270_v21, %s2685_s9 }
  0xf5   : > { %2596 = vmatpush3.bf16.msra.mxu0 %v2593_v11  ;;  %2604 = vmatpush3.bf16.msra.mxu1 %v2593_v11 }
  0xf6   : > { %v3449_v44 = vpop.permute.xlu1 %838  ;;  %v3451_v49 = vpop.permute.xlu0 %836  ;;  %2598 = vmatprep.subr.bf16.mxu0 %v2597_v43  ;;  %2602 = vmatprep.subr.bf16.mxu1 %v2597_v43 }
  0xf8   : > { %1192 = vrot.lane.b32.xlu0 %v3134_v61, %s2685_s9  ;;  %1224 = vrot.lane.b32.xlu1 %v3262_v22, %s2685_s9 }
  0xf9   : > { %2600 = vmatpush3.bf16.msra.mxu0 %v2597_v43  ;;  %2605 = vmatpush3.bf16.msra.mxu1 %v2597_v43 }
  0xfa   : > { %v3463_v10 = vpop.permute.xlu1 %842  ;;  %v3465_v31 = vpop.permute.xlu0 %840 }
  0xfb   : > { %4742 = vst [vmem:[#allocation81_spill] sm:$0xff] %v3465_v31 }
  0xfc   : > { %1286 = vrot.lane.b32.xlu0 %v2749_v0, %s2686_s14  ;;  %1318 = vrot.lane.b32.xlu1 %v2858_v25, %s2686_s14  ;;  %v1747_v0 = vld [vmem:[%s4571_s3 + $0x20] sm:$0xf] }
  0xfd   : > { %2543 = vmatprep.subr.msk.mxu0 %vm1851_vm2, %v1747_v0  ;;  %2603 = vmatprep.subr.msk.mxu1 %vm1851_vm2, %v1747_v0 }
  0xfe   : > { %v3477_v33 = vpop.permute.xlu1 %846  ;;  %v3479_v31 = vpop.permute.xlu0 %844  ;;  %2544 = vmatpush3.msk.msra.mxu0 %vm1851_vm2, %v1747_v0  ;;  %2606 = vmatpush3.msk.msra.mxu1 %vm1851_vm2, %v1747_v0  ;;  %v1484_v0 = vsel %vm1479_vm3, %v3142_v16, %v3077_v38  ;;  %v1486_v16 = vsel %vm1479_vm3, %v3158_v59, %v3124_v41  ;;  %v1488_v41 = vsel %vm1479_vm3, %v3174_v14, %v3137_v2 }
  0xff   : > { %v1491_v2 = vsel %vm1479_vm3, %v3182_v37, %v3155_v58  ;;  %v1493_v58 = vsel %vm1479_vm3, %v3198_v15, %v3171_v39  ;;  %v4749_v39 = vld [vmem:[#allocation41_spill] sm:$0xff] }
 0x100   : > { %1032 = vrot.lane.b32.xlu0 %v2858_v25, %s2683_s7  ;;  %1288 = vrot.lane.b32.xlu1 %v2774_v7, %s2686_s14 }
 0x102   : > { %v3488_v11 = vpop.permute.xlu1 %850  ;;  %v3490_v30 = vpop.permute.xlu0 %848 }
 0x104   : > { %1320 = vrot.lane.b32.xlu0 %v2861_v26, %s2686_s14  ;;  %1383 = vrot.lane.b32.xlu1 %v2941_v48, %s2687_s27 }
 0x106   : > { %v3496_v7 = vpop.permute.xlu0 %900  ;;  %v3498_v25 = vpop.permute.xlu1 %902 }
 0x107   : > { %4743 = vst [vmem:[#allocation82_spill] sm:$0xff] %v3496_v7  ;;  %4744 = vst [vmem:[#allocation83_spill] sm:$0xff] %v3498_v25  ;;  %v1485_v25 = vsel %vm1479_vm3, %v3134_v61, %v3111_v53  ;;  %v1487_v53 = vsel %vm1479_vm3, %v3150_v45, %v3126_v50  ;;  %v1519_v61 = vsel %vm1512_vm4, %v1486_v16, %v3379_v17 }
 0x108   : > { %1415 = vrot.lane.b32.xlu0 %v3037_v57, %s2687_s27  ;;  %1034 = vrot.lane.b32.xlu1 %v2861_v26, %s2683_s7  ;;  %v1518_v26 = vsel %vm1512_vm4, %v1485_v25, %v3369_v29  ;;  %v1520_v38 = vsel %vm1512_vm4, %v1487_v53, %v3377_v42  ;;  %v1489_v50 = vsel %vm1479_vm3, %v3166_v63, %v3139_v6 }
 0x109   : > { %v1522_v17 = vsel %vm1512_vm4, %v1489_v50, %v3385_v28  ;;  %v1521_v42 = vsel %vm1512_vm4, %v1488_v41, %v3387_v36  ;;  %v1490_v6 = vsel %vm1479_vm3, %v3190_v60, %v3153_v40  ;;  %v1524_v28 = vsel %vm1512_vm4, %v1491_v2, %v3393_v34  ;;  %v4757_v2 = vld [vmem:[#allocation49_spill] sm:$0xff] }
 0x10a   : > { %v3504_v46 = vpop.permute.xlu0 %904  ;;  %v3506_v43 = vpop.permute.xlu1 %906  ;;  %v1523_v36 = vsel %vm1512_vm4, %v1490_v6, %v3395_v35  ;;  %v1492_v40 = vsel %vm1479_vm3, %v3206_v55, %v3169_v3  ;;  %v1526_v35 = vsel %vm1512_vm4, %v1493_v58, %v3401_v1  ;;  %v1494_v3 = vsel %vm1479_vm3, %v3222_v51, %v3185_v56  ;;  %v4750_v1 = vld [vmem:[#allocation44_spill] sm:$0xff]  ;;  %v4755_v6 = vld [vmem:[#allocation26_spill] sm:$0xff] }
 0x10b   : > { %4745 = vst [vmem:[#allocation84_spill] sm:$0xff] %v3504_v46  ;;  %4746 = vst [vmem:[#allocation85_spill] sm:$0xff] %v3506_v43  ;;  %v1517_v43 = vsel %vm1512_vm4, %v1484_v0, %v3371_v19  ;;  %v1525_v34 = vsel %vm1512_vm4, %v1492_v40, %v3403_v4  ;;  %v1495_v4 = vsel %vm1479_vm3, %v4750_v1, %v4749_v39 }
 0x10c   : > { %1097 = vrot.lane.b32.xlu0 %v2941_v48, %s2684_s8  ;;  %1129 = vrot.lane.b32.xlu1 %v3037_v57, %s2684_s8 }
 0x10e   : > { %v909_v48 = vpop.permute.xlu0 %908  ;;  %v911_v46 = vpop.permute.xlu1 %910 }
 0x10f   : > { %v3523_v57 = vsel %vm1545_vm5, %v1517_v43, %v909_v48  ;;  %v3526_v7 = vsel %vm1545_vm5, %v1518_v26, %v911_v46 }
 0x110   : > { %1385 = vrot.lane.b32.xlu0 %v2938_v47, %s2687_s27  ;;  %1417 = vrot.lane.b32.xlu1 %v3034_v54, %s2687_s27 }
 0x112   : > { %v913_v19 = vpop.permute.xlu0 %912  ;;  %v915_v29 = vpop.permute.xlu1 %914 }
 0x113   : > { %v3543_v25 = vsel %vm1545_vm5, %v1519_v61, %v913_v19  ;;  %v3546_v46 = vsel %vm1545_vm5, %v1520_v38, %v915_v29  ;;  %v1528_v19 = vsel %vm1512_vm4, %v1495_v4, %v3409_v20  ;;  %v1527_v29 = vsel %vm1512_vm4, %v1494_v3, %v3411_v32  ;;  %v4753_v32 = vld [vmem:[#allocation6_spill] sm:$0xff] }
 0x114   : > { %1099 = vrot.lane.b32.xlu0 %v2938_v47, %s2684_s8  ;;  %1131 = vrot.lane.b32.xlu1 %v3034_v54, %s2684_s8 }
 0x116   : > { %v917_v43 = vpop.permute.xlu0 %916  ;;  %v919_v0 = vpop.permute.xlu1 %918 }
 0x117   : > { %v3563_v47 = vsel %vm1545_vm5, %v1521_v42, %v917_v43  ;;  %v3566_v54 = vsel %vm1545_vm5, %v1522_v17, %v919_v0  ;;  %v4754_v42 = vld [vmem:[#allocation12_spill] sm:$0xff] }
 0x118   : > { %1194 = vrot.lane.b32.xlu0 %v3158_v59, %s2685_s9  ;;  %1226 = vrot.lane.b32.xlu1 %v3286_v62, %s2685_s9 }
 0x11a   : > { %v921_v26 = vpop.permute.xlu0 %920  ;;  %v923_v48 = vpop.permute.xlu1 %922 }
 0x11b   : > { %v3583_v59 = vsel %vm1545_vm5, %v1523_v36, %v921_v26  ;;  %v3586_v16 = vsel %vm1545_vm5, %v1524_v28, %v923_v48  ;;  %v1501_v28 = vsel %vm1479_vm3, %v3262_v22, %v4757_v2  ;;  %v4758_v22 = vld [vmem:[#allocation52_spill] sm:$0xff] }
 0x11c   : > { %1196 = vrot.lane.b32.xlu0 %v3150_v45, %s2685_s9  ;;  %1228 = vrot.lane.b32.xlu1 %v3278_v5, %s2685_s9  ;;  %v1534_v36 = vsel %vm1512_vm4, %v1501_v28, %v3433_v12  ;;  %v4759_v12 = vld [vmem:[#allocation53_spill] sm:$0xff]  ;;  %v4765_v2 = vld [vmem:[#allocation64_spill] sm:$0xff]  ;;  %v4766_v28 = vld [vmem:[#allocation58_spill] sm:$0xff] }
 0x11e   : > { %v925_v53 = vpop.permute.xlu0 %924  ;;  %v927_v38 = vpop.permute.xlu1 %926 }
 0x11f   : > { %v3603_v45 = vsel %vm1545_vm5, %v1525_v34, %v925_v53  ;;  %v3606_v61 = vsel %vm1545_vm5, %v1526_v35, %v927_v38 }
 0x120   : > { %4747 = vst [vmem:[#allocation86_spill] sm:$0xff] %v3603_v45  ;;  %4748 = vst [vmem:[#allocation87_spill] sm:$0xff] %v3606_v61  ;;  %1290 = vrot.lane.b32.xlu0 %v2781_v8, %s2686_s14  ;;  %1322 = vrot.lane.b32.xlu1 %v2868_v27, %s2686_s14  ;;  %v4799_v61 = vld [vmem:[#allocation50_spill] sm:$0xff] }
 0x121   : > { %v4800_v45 = vld [vmem:[#allocation30_spill] sm:$0xff] }
 0x122   : > { %v929_v41 = vpop.permute.xlu0 %928  ;;  %v931_v50 = vpop.permute.xlu1 %930 }
 0x123   : > { %v3623_v8 = vsel %vm1545_vm5, %v1527_v29, %v929_v41  ;;  %v3626_v17 = vsel %vm1545_vm5, %v1528_v19, %v931_v50  ;;  %v4761_v19 = vld [vmem:[#allocation25_spill] sm:$0xff]  ;;  %v4763_v29 = vld [vmem:[#allocation56_spill] sm:$0xff] }
 0x124   : > { %4751 = vst [vmem:[#allocation41_spill] sm:$0xff] %v3623_v8  ;;  %4752 = vst [vmem:[#allocation44_spill] sm:$0xff] %v3626_v17  ;;  %1036 = vrot.lane.b32.xlu0 %v2868_v27, %s2683_s7  ;;  %1292 = vrot.lane.b32.xlu1 %v2784_v9, %s2686_s14  ;;  %v4756_v9 = vld [vmem:[#allocation48_spill] sm:$0xff]  ;;  %v4794_v17 = vld [vmem:[#allocation10_spill] sm:$0xff] }
 0x125   : > { %v1500_v27 = vsel %vm1479_vm3, %v3270_v21, %v4756_v9  ;;  %v1502_v21 = vsel %vm1479_vm3, %v3286_v62, %v4758_v22  ;;  %v4760_v62 = vld [vmem:[#allocation11_spill] sm:$0xff] }
 0x126   : > { %v3632_v56 = vpop.permute.xlu0 %932  ;;  %v3634_v20 = vpop.permute.xlu1 %934  ;;  %v1533_v26 = vsel %vm1512_vm4, %v1500_v27, %v3435_v13  ;;  %v1503_v13 = vsel %vm1479_vm3, %v3278_v5, %v4759_v12  ;;  %v1535_v53 = vsel %vm1512_vm4, %v1502_v21, %v3443_v24  ;;  %v4762_v5 = vld [vmem:[#allocation55_spill] sm:$0xff]  ;;  %v1505_v24 = vsel %vm1479_vm3, %v3294_v18, %v4763_v29  ;;  %v4764_v27 = vld [vmem:[#allocation57_spill] sm:$0xff] }
 0x127   : > { %v1536_v34 = vsel %vm1512_vm4, %v1503_v13, %v3441_v23  ;;  %v1504_v23 = vsel %vm1479_vm3, %v3302_v52, %v4762_v5  ;;  %v1538_v41 = vsel %vm1512_vm4, %v1505_v24, %v3449_v44  ;;  %v1506_v44 = vsel %vm1479_vm3, %v4765_v2, %v4764_v27  ;;  %v4776_v24 = vld [vmem:[#allocation62_spill] sm:$0xff] }
 0x128   : > { %1324 = vrot.lane.b32.xlu0 %v4753_v32, %s2686_s14  ;;  %1387 = vrot.lane.b32.xlu1 %v4754_v42, %s2687_s27  ;;  %v1537_v50 = vsel %vm1512_vm4, %v1504_v23, %v3451_v49  ;;  %v4767_v49 = vld [vmem:[#allocation61_spill] sm:$0xff] }
 0x12a   : > { %v3640_v43 = vpop.permute.xlu0 %936  ;;  %v3642_v0 = vpop.permute.xlu1 %938 }
 0x12c   : > { %1419 = vrot.lane.b32.xlu0 %v4755_v6, %s2687_s27  ;;  %1038 = vrot.lane.b32.xlu1 %v4753_v32, %s2683_s7 }
 0x12e   : > { %v941_v48 = vpop.permute.xlu0 %940  ;;  %v943_v40 = vpop.permute.xlu1 %942 }
 0x12f   : > { %v3659_v58 = vsel %vm1545_vm5, %v1533_v26, %v941_v48  ;;  %v3662_v35 = vsel %vm1545_vm5, %v1534_v36, %v943_v40  ;;  %v1507_v36 = vsel %vm1479_vm3, %v4767_v49, %v4766_v28  ;;  %v4768_v48 = vld [vmem:[#allocation81_spill] sm:$0xff] }
 0x130   : > { %1101 = vrot.lane.b32.xlu0 %v4754_v42, %s2684_s8  ;;  %1133 = vrot.lane.b32.xlu1 %v4755_v6, %s2684_s8  ;;  %v1540_v26 = vsel %vm1512_vm4, %v1507_v36, %v3463_v10  ;;  %v1539_v40 = vsel %vm1512_vm4, %v1506_v44, %v4768_v48  ;;  %v4782_v36 = vld [vmem:[#allocation3_spill] sm:$0xff] }
 0x132   : > { %v945_v38 = vpop.permute.xlu0 %944  ;;  %v947_v3 = vpop.permute.xlu1 %946 }
 0x133   : > { %v3679_v39 = vsel %vm1545_vm5, %v1535_v53, %v945_v38  ;;  %v3682_v4 = vsel %vm1545_vm5, %v1536_v34, %v947_v3  ;;  %v4770_v34 = vld [vmem:[#allocation59_spill] sm:$0xff]  ;;  %v4771_v53 = vld [vmem:[#allocation70_spill] sm:$0xff]  ;;  %v4772_v38 = vld [vmem:[#allocation60_spill] sm:$0xff] }
 0x134   : > { %1389 = vrot.lane.b32.xlu0 %v4760_v62, %s2687_s27  ;;  %1421 = vrot.lane.b32.xlu1 %v4761_v19, %s2687_s27  ;;  %v1508_v10 = vsel %vm1479_vm3, %v4771_v53, %v4770_v34  ;;  %v4773_v3 = vld [vmem:[#allocation65_spill] sm:$0xff]  ;;  %v4786_v34 = vld [vmem:[#allocation14_spill] sm:$0xff] }
 0x135   : > { %v1541_v5 = vsel %vm1512_vm4, %v1508_v10, %v3479_v31  ;;  %v4779_v31 = vld [vmem:[#allocation71_spill] sm:$0xff] }
 0x136   : > { %v949_v32 = vpop.permute.xlu0 %948  ;;  %v951_v42 = vpop.permute.xlu1 %950 }
 0x137   : > { %v3699_v6 = vsel %vm1545_vm5, %v1537_v50, %v949_v32  ;;  %v3702_v9 = vsel %vm1545_vm5, %v1538_v41, %v951_v42  ;;  %v4777_v41 = vld [vmem:[#allocation74_spill] sm:$0xff]  ;;  %v4778_v50 = vld [vmem:[#allocation63_spill] sm:$0xff] }
 0x138   : > { %1103 = vrot.lane.b32.xlu0 %v4760_v62, %s2684_s8  ;;  %1135 = vrot.lane.b32.xlu1 %v4761_v19, %s2684_s8  ;;  %v1509_v62 = vsel %vm1479_vm3, %v4773_v3, %v4772_v38  ;;  %v1511_v32 = vsel %vm1479_vm3, %v4779_v31, %v4778_v50 }
 0x139   : > { %v1542_v19 = vsel %vm1512_vm4, %v1509_v62, %v3477_v33  ;;  %v1510_v33 = vsel %vm1479_vm3, %v4777_v41, %v4776_v24  ;;  %v1544_v42 = vsel %vm1512_vm4, %v1511_v32, %v3488_v11  ;;  %v4784_v11 = vld [vmem:[#allocation4_spill] sm:$0xff]  ;;  %v4788_v24 = vld [vmem:[#allocation13_spill] sm:$0xff] }
 0x13a   : > { %v953_v22 = vpop.permute.xlu0 %952  ;;  %v955_v21 = vpop.permute.xlu1 %954  ;;  %v1543_v27 = vsel %vm1512_vm4, %v1510_v33, %v3490_v30  ;;  %v4787_v62 = vld [vmem:[#allocation28_spill] sm:$0xff]  ;;  %v4789_v33 = vld [vmem:[#allocation27_spill] sm:$0xff] }
 0x13b   : > { %v3719_v12 = vsel %vm1545_vm5, %v1539_v40, %v953_v22  ;;  %v3722_v13 = vsel %vm1545_vm5, %v1540_v26, %v955_v21  ;;  %v4783_v26 = vld [vmem:[#allocation7_spill] sm:$0xff]  ;;  %v4785_v21 = vld [vmem:[#allocation8_spill] sm:$0xff] }
 0x13c   : > { %4769 = vst [vmem:[#allocation6_spill] sm:$0xff] %v3722_v13  ;;  %1198 = vrot.lane.b32.xlu0 %v3174_v14, %s2685_s9  ;;  %1230 = vrot.lane.b32.xlu1 %v3302_v52, %s2685_s9 }
 0x13e   : > { %v957_v23 = vpop.permute.xlu0 %956  ;;  %v959_v29 = vpop.permute.xlu1 %958 }
 0x13f   : > { %v3739_v14 = vsel %vm1545_vm5, %v1541_v5, %v957_v23  ;;  %v3742_v52 = vsel %vm1545_vm5, %v1542_v19, %v959_v29 }
 0x140   : > { %4774 = vst [vmem:[#allocation12_spill] sm:$0xff] %v3739_v14  ;;  %4775 = vst [vmem:[#allocation26_spill] sm:$0xff] %v3742_v52  ;;  %1200 = vrot.lane.b32.xlu0 %v3166_v63, %s2685_s9  ;;  %1232 = vrot.lane.b32.xlu1 %v3294_v18, %s2685_s9 }
 0x142   : > { %v961_v44 = vpop.permute.xlu0 %960  ;;  %v963_v28 = vpop.permute.xlu1 %962 }
 0x143   : > { %v3759_v63 = vsel %vm1545_vm5, %v1543_v27, %v961_v44  ;;  %v3762_v18 = vsel %vm1545_vm5, %v1544_v42, %v963_v28 }
 0x144   : > { %4780 = vst [vmem:[#allocation48_spill] sm:$0xff] %v3759_v63  ;;  %4781 = vst [vmem:[#allocation49_spill] sm:$0xff] %v3762_v18  ;;  %1294 = vrot.lane.b32.xlu0 %v4782_v36, %s2686_s14  ;;  %1326 = vrot.lane.b32.xlu1 %v4783_v26, %s2686_s14  ;;  %v4793_v18 = vld [vmem:[#allocation34_spill] sm:$0xff]  ;;  %v4795_v63 = vld [vmem:[#allocation16_spill] sm:$0xff] }
 0x146   : > { %v997_v48 = vpop.permute.xlu0 %996  ;;  %v3768_v40 = vpop.permute.xlu1 %998 }
 0x148   : > { %1040 = vrot.lane.b32.xlu0 %v4783_v26, %s2683_s7  ;;  %1296 = vrot.lane.b32.xlu1 %v4784_v11, %s2686_s14  ;;  %v2640_v11 = vld [vmem:[%s2746_s25 + $0x40] sm:$0xff] }
 0x14a   : > { %v3774_v30 = vpop.permute.xlu0 %1000  ;;  %v3776_v22 = vpop.permute.xlu1 %1002 }
 0x14c   : > { %1328 = vrot.lane.b32.xlu0 %v4785_v21, %s2686_s14  ;;  %1391 = vrot.lane.b32.xlu1 %v4786_v34, %s2687_s27 }
 0x14e   : > { %v3782_v10 = vpop.permute.xlu0 %1004  ;;  %v3784_v38 = vpop.permute.xlu1 %1006 }
 0x150   : > { %1423 = vrot.lane.b32.xlu0 %v4787_v62, %s2687_s27  ;;  %1042 = vrot.lane.b32.xlu1 %v4785_v21, %s2683_s7 }
 0x152   : > { %v3790_v19 = vpop.permute.xlu0 %1008  ;;  %v3792_v5 = vpop.permute.xlu1 %1010 }
 0x154   : > { %1105 = vrot.lane.b32.xlu0 %v4786_v34, %s2684_s8  ;;  %1137 = vrot.lane.b32.xlu1 %v4787_v62, %s2684_s8  ;;  %v2641_v34 = vld [vmem:[%s2746_s25 + $0x48] sm:$0xff] }
 0x156   : > { %v3798_v23 = vpop.permute.xlu0 %1012  ;;  %v3800_v29 = vpop.permute.xlu1 %1014 }
 0x158   : > { %1393 = vrot.lane.b32.xlu0 %v4788_v24, %s2687_s27  ;;  %1425 = vrot.lane.b32.xlu1 %v4789_v33, %s2687_s27 }
 0x15a   : > { %v1029_v50 = vpop.permute.xlu0 %1028  ;;  %v3806_v32 = vpop.permute.xlu1 %1030 }
 0x15c   : > { %1107 = vrot.lane.b32.xlu0 %v4788_v24, %s2684_s8  ;;  %1139 = vrot.lane.b32.xlu1 %v4789_v33, %s2684_s8 }
 0x15e   : > { %v1094_v42 = vpop.permute.xlu0 %1093  ;;  %v1126_v27 = vpop.permute.xlu1 %1125 }
 0x160   : > { %1202 = vrot.lane.b32.xlu0 %v3190_v60, %s2685_s9  ;;  %1234 = vrot.lane.b32.xlu1 %v4765_v2, %s2685_s9  ;;  %v4790_v60 = vld [vmem:[#allocation9_spill] sm:$0xff] }
 0x162   : > { %v3816_v44 = vpop.permute.xlu0 %1095  ;;  %v3818_v28 = vpop.permute.xlu1 %1127 }
 0x164   : > { %1204 = vrot.lane.b32.xlu0 %v3182_v37, %s2685_s9  ;;  %1236 = vrot.lane.b32.xlu1 %v4767_v49, %s2685_s9  ;;  %v4791_v37 = vld [vmem:[#allocation2_spill] sm:$0xff] }
 0x165   : > { %v4792_v62 = vrot.slane %v4791_v37, 7  ;;  %v4797_v37 = vld [vmem:[#allocation82_spill] sm:$0xff] }
 0x166   : > { %v1191_v36 = vpop.permute.xlu0 %1190  ;;  %v1223_v26 = vpop.permute.xlu1 %1222 }
 0x167   : > { %v566_v49 = vsel %vm477_vm0, 0.0, %v4792_v62 }
 0x168   : > { %1298 = vrot.lane.b32.xlu0 %v2640_v11, %s2686_s14  ;;  %1330 = vrot.lane.b32.xlu1 %v4790_v60, %s2686_s14  ;;  %v1480_v11 = vsel %vm1479_vm3, %v566_v49, %v4793_v18  ;;  %v4798_v49 = vld [vmem:[#allocation42_spill] sm:$0xff] }
 0x16a   : > { %v1193_v21 = vpop.permute.xlu0 %1192  ;;  %v1225_v2 = vpop.permute.xlu1 %1224 }
 0x16c   : > { %1044 = vrot.lane.b32.xlu0 %v4790_v60, %s2683_s7  ;;  %1300 = vrot.lane.b32.xlu1 %v2641_v34, %s2686_s14  ;;  %v4796_v60 = vld [vmem:[#allocation66_spill] sm:$0xff] }
 0x16d   : > { %v1513_v34 = vsel %vm1512_vm4, %v1480_v11, %v4796_v60  ;;  %v2642_v11 = vld [vmem:[%s2746_s25 + $0xc8] sm:$0xff]  ;;  %v4801_v60 = vld [vmem:[#allocation78_spill] sm:$0xff] }
 0x16e   : > { %v1287_v24 = vpop.permute.xlu0 %1286  ;;  %v1319_v33 = vpop.permute.xlu1 %1318  ;;  %v1546_v62 = vsel %vm1545_vm5, %v1513_v34, %v4797_v37 }
 0x16f   : > { %v1579_v18 = vsel %vm1578_vm6, %v1546_v62, %v997_v48 }
 0x170   : > { %1332 = vrot.lane.b32.xlu0 %v4794_v17, %s2686_s14  ;;  %1395 = vrot.lane.b32.xlu1 %v4795_v63, %s2687_s27  ;;  %v1496_v17 = vsel %vm1479_vm3, %v4799_v61, %v4798_v49  ;;  %v1612_v14 = vsel %vm1611_vm7, %v1579_v18, %v1094_v42 }
 0x171   : > { %v1529_v34 = vsel %vm1512_vm4, %v1496_v17, %v4801_v60  ;;  %v1645_v37 = vsel %vm1644_vm8, %v1612_v14, %v1191_v36  ;;  %v4803_v17 = vld [vmem:[#allocation5_spill] sm:$0xff]  ;;  %v4804_v60 = vld [vmem:[#allocation43_spill] sm:$0xff] }
 0x172   : > { %v3845_v8 = vpop.permute.xlu0 %1032  ;;  %v1289_v52 = vpop.permute.xlu1 %1288  ;;  %v1562_v48 = vsel %vm1545_vm5, %v1529_v34, %v3632_v56  ;;  %v1678_v62 = vsel %vm1677_vm9, %v1645_v37, %v1287_v24 }
 0x173   : > { %v1595_v42 = vsel %vm1578_vm6, %v1562_v48, %v1029_v50  ;;  %v4809_v48 = vld [vmem:[#allocation77_spill] sm:$0xff] }
 0x174   : > { %1427 = vrot.lane.b32.xlu0 %v4800_v45, %s2687_s27  ;;  %1046 = vrot.lane.b32.xlu1 %v2642_v11, %s2683_s7  ;;  %v1628_v11 = vsel %vm1611_vm7, %v1595_v42, %v1126_v27  ;;  %v4810_v42 = vld [vmem:[#allocation83_spill] sm:$0xff] }
 0x175   : > { %v1661_v14 = vsel %vm1644_vm8, %v1628_v11, %v1223_v26  ;;  %v4807_v26 = vld [vmem:[#allocation29_spill] sm:$0xff] }
 0x176   : > { %v1321_v49 = vpop.permute.xlu0 %1320  ;;  %v1384_v13 = vpop.permute.xlu1 %1383  ;;  %v1694_v56 = vsel %vm1677_vm9, %v1661_v14, %v1319_v33  ;;  %v4808_v33 = vld [vmem:[#allocation67_spill] sm:$0xff] }
 0x177   : > { %v1711_v18 = vsel %vm1710_vm10, %v1678_v62, %v1384_v13  ;;  %v4802_v13 = vld [vmem:[#allocation38_spill] sm:$0xff] }
 0x178   : > { %1109 = vrot.lane.b32.xlu0 %v4795_v63, %s2684_s8  ;;  %1141 = vrot.lane.b32.xlu1 %v4800_v45, %s2684_s8  ;;  %v1481_v27 = vsel %vm1479_vm3, %v4803_v17, %v4802_v13  ;;  %v4805_v63 = vld [vmem:[#allocation47_spill] sm:$0xff] }
 0x179   : > { %2545 = vmatprep.mubr.msk.f32.mxu0 %vm1754_vm11, %v1711_v18  ;;  %v1497_v34 = vsel %vm1479_vm3, %v4805_v63, %v4804_v60  ;;  %v4806_v45 = vld [vmem:[#allocation15_spill] sm:$0xff]  ;;  %v1514_v37 = vsel %vm1512_vm4, %v1481_v27, %v4808_v33 }
 0x17a   : > { %v1416_v36 = vpop.permute.xlu0 %1415  ;;  %v3872_v24 = vpop.permute.xlu1 %1034  ;;  %v1530_v62 = vsel %vm1512_vm4, %v1497_v34, %v4809_v48  ;;  %v1547_v18 = vsel %vm1545_vm5, %v1514_v37, %v4810_v42  ;;  %v4811_v37 = vld [vmem:[#allocation31_spill] sm:$0xff]  ;;  %v2646_v42 = vld [vmem:[%s2746_s25 + $0xd8] sm:$0xff] }
 0x17b   : > { %v1727_v50 = vsel %vm1710_vm10, %v1694_v56, %v1416_v36  ;;  %v1563_v11 = vsel %vm1545_vm5, %v1530_v62, %v3634_v20  ;;  %v1580_v36 = vsel %vm1578_vm6, %v1547_v18, %v3768_v40  ;;  %v4812_v48 = vld [vmem:[#allocation39_spill] sm:$0xff]  ;;  %v2645_v62 = vld [vmem:[%s2746_s25 + $0x58] sm:$0xff] }
 0x17c   : > { %1397 = vrot.lane.b32.xlu0 %v4806_v45, %s2687_s27  ;;  %1429 = vrot.lane.b32.xlu1 %v4807_v26, %s2687_s27  ;;  %v1596_v13 = vsel %vm1578_vm6, %v1563_v11, %v3806_v32  ;;  %v1613_v17 = vsel %vm1611_vm7, %v1580_v36, %v3816_v44  ;;  %v4813_v18 = vld [vmem:[#allocation73_spill] sm:$0xff]  ;;  %v4814_v36 = vld [vmem:[#allocation84_spill] sm:$0xff] }
 0x17d   : > { %2569 = vmatprep.mubr.msk.f32.mxu1 %vm1754_vm11, %v1727_v50  ;;  %v1629_v50 = vsel %vm1611_vm7, %v1596_v13, %v3818_v28  ;;  %v1646_v20 = vsel %vm1644_vm8, %v1613_v17, %v1193_v21 }
 0x17e   : > { %v1098_v14 = vpop.permute.xlu0 %1097  ;;  %v1130_v56 = vpop.permute.xlu1 %1129  ;;  %v1662_v27 = vsel %vm1644_vm8, %v1629_v50, %v1225_v2  ;;  %v1679_v40 = vsel %vm1677_vm9, %v1646_v20, %v1289_v52 }
 0x17f   : > { %v1695_v32 = vsel %vm1677_vm9, %v1662_v27, %v1321_v49  ;;  %v4815_v27 = vld [vmem:[#allocation45_spill] sm:$0xff] }
 0x180   : > { %1111 = vrot.lane.b32.xlu0 %v4806_v45, %s2684_s8  ;;  %1143 = vrot.lane.b32.xlu1 %v4807_v26, %s2684_s8 }
 0x182   : > { %v1386_v60 = vpop.permute.xlu0 %1385  ;;  %v1418_v44 = vpop.permute.xlu1 %1417 }
 0x183   : > { %v1712_v28 = vsel %vm1710_vm10, %v1679_v40, %v1386_v60  ;;  %v1728_v34 = vsel %vm1710_vm10, %v1695_v32, %v1418_v44  ;;  %v4816_v40 = vld [vmem:[#allocation54_spill] sm:$0xff] }
 0x184   : > { %1206 = vrot.lane.b32.xlu0 %v3206_v55, %s2685_s9  ;;  %1238 = vrot.lane.b32.xlu1 %v4771_v53, %s2685_s9  ;;  %v2643_v55 = vld [vmem:[%s2746_s25 + $0x50] sm:$0xff]  ;;  %v1498_v32 = vsel %vm1479_vm3, %v4816_v40, %v4815_v27  ;;  %v4817_v44 = vld [vmem:[#allocation18_spill] sm:$0xff] }
 0x185   : > { %2546 = vmatmul.mubr.msk.f32.vlgmr.msra.gmra.mrb[0].mxu0 %vm1754_vm11, %v1712_v28  ;;  %2570 = vmatmul.mubr.msk.f32.vlgmr.msra.gmra.mrb[0].mxu1 %vm1754_vm11, %v1728_v34  ;;  %v2644_v53 = vld [vmem:[%s2746_s25 + $0xd0] sm:$0xff]  ;;  %v4818_v28 = vld [vmem:[#allocation33_spill] sm:$0xff] }
 0x186   : > { %v1100_v52 = vpop.permute.xlu0 %1099  ;;  %v1132_v21 = vpop.permute.xlu1 %1131  ;;  %v4819_v34 = vld [vmem:[#allocation80_spill] sm:$0xff] }
 0x188   : > { %1208 = vrot.lane.b32.xlu0 %v3198_v15, %s2685_s9  ;;  %1240 = vrot.lane.b32.xlu1 %v4773_v3, %s2685_s9  ;;  %v1482_v3 = vsel %vm1479_vm3, %v4812_v48, %v4811_v37 }
 0x189   : > { %v1515_v11 = vsel %vm1512_vm4, %v1482_v3, %v4813_v18 }
 0x18a   : > { %v1195_v2 = vpop.permute.xlu0 %1194  ;;  %v1227_v49 = vpop.permute.xlu1 %1226  ;;  %v1548_v13 = vsel %vm1545_vm5, %v1515_v11, %v4814_v36 }
 0x18b   : > { %v1581_v20 = vsel %vm1578_vm6, %v1548_v13, %v3774_v30 }
 0x18c   : > { %1302 = vrot.lane.b32.xlu0 %v2643_v55, %s2686_s14  ;;  %1334 = vrot.lane.b32.xlu1 %v2644_v53, %s2686_s14  ;;  %v1614_v60 = vsel %vm1611_vm7, %v1581_v20, %v1098_v14  ;;  %v4821_v20 = vld [vmem:[#allocation40_spill] sm:$0xff] }
 0x18e   : > { %v1197_v45 = vpop.permute.xlu0 %1196  ;;  %v1229_v26 = vpop.permute.xlu1 %1228 }
 0x190   : > { %1016 = vrot.lane.b32.xlu0 %v2643_v55, %s2683_s7  ;;  %1048 = vrot.lane.b32.xlu1 %v2644_v53, %s2683_s7  ;;  %v1531_v55 = vsel %vm1512_vm4, %v1498_v32, %v4819_v34  ;;  %v1647_v53 = vsel %vm1644_vm8, %v1614_v60, %v1195_v2  ;;  %v4823_v32 = vld [vmem:[#allocation51_spill] sm:$0xff]  ;;  %v4826_v34 = vld [vmem:[#allocation85_spill] sm:$0xff] }
 0x191   : > { %v1564_v30 = vsel %vm1545_vm5, %v1531_v55, %v3640_v43 }
 0x192   : > { %v1291_v33 = vpop.permute.xlu0 %1290  ;;  %v1323_v15 = vpop.permute.xlu1 %1322  ;;  %v1597_v14 = vsel %vm1578_vm6, %v1564_v30, %v3845_v8  ;;  %v4820_v8 = vld [vmem:[#allocation35_spill] sm:$0xff] }
 0x193   : > { %v1680_v37 = vsel %vm1677_vm9, %v1647_v53, %v1291_v33  ;;  %v1630_v11 = vsel %vm1611_vm7, %v1597_v14, %v1130_v56  ;;  %v1483_v27 = vsel %vm1479_vm3, %v4821_v20, %v4820_v8  ;;  %v4822_v56 = vld [vmem:[#allocation46_spill] sm:$0xff] }
 0x194   : > { %1304 = vrot.lane.b32.xlu0 %v2645_v62, %s2686_s14  ;;  %1336 = vrot.lane.b32.xlu1 %v2646_v42, %s2686_s14  ;;  %v1663_v2 = vsel %vm1644_vm8, %v1630_v11, %v1227_v49  ;;  %v4824_v49 = vld [vmem:[#allocation72_spill] sm:$0xff]  ;;  %v2647_v20 = vld [vmem:[%s2746_s25 + $0x60] sm:$0xff] }
 0x195   : > { %v1696_v43 = vsel %vm1677_vm9, %v1663_v2, %v1323_v15  ;;  %v1516_v15 = vsel %vm1512_vm4, %v1483_v27, %v4824_v49  ;;  %v4828_v11 = vld [vmem:[#allocation32_spill] sm:$0xff]  ;;  %v2648_v27 = vld [vmem:[%s2746_s25 + $0xe0] sm:$0xff]  ;;  %v2649_v49 = vld [vmem:[%s2746_s25 + $0x68] sm:$0xff] }
 0x196   : > { %v3939_v17 = vpop.permute.xlu0 %1036  ;;  %v1293_v50 = vpop.permute.xlu1 %1292  ;;  %v1549_v55 = vsel %vm1545_vm5, %v1516_v15, %v4826_v34  ;;  %v2650_v15 = vld [vmem:[%s2746_s25 + $0xe8] sm:$0xff] }
 0x198   : > { %1399 = vrot.lane.b32.xlu0 %v4817_v44, %s2687_s27  ;;  %1431 = vrot.lane.b32.xlu1 %v4818_v28, %s2687_s27 }
 0x19a   : > { %v1325_v48 = vpop.permute.xlu0 %1324  ;;  %v1388_v3 = vpop.permute.xlu1 %1387 }
 0x19b   : > { %v1713_v18 = vsel %vm1710_vm10, %v1680_v37, %v1388_v3 }
 0x19c   : > { %1018 = vrot.lane.b32.xlu0 %v2645_v62, %s2683_s7  ;;  %1050 = vrot.lane.b32.xlu1 %v2646_v42, %s2683_s7  ;;  %v1499_v62 = vsel %vm1479_vm3, %v4823_v32, %v4822_v56  ;;  %v4825_v42 = vld [vmem:[#allocation79_spill] sm:$0xff] }
 0x19d   : > { %2548 = vmatprep.mubr.msk.f32.mxu0 %vm1754_vm11, %v1713_v18  ;;  %v1532_v60 = vsel %vm1512_vm4, %v1499_v62, %v4825_v42  ;;  %v4827_v18 = vld [vmem:[#allocation17_spill] sm:$0xff] }
 0x19e   : > { %v1420_v33 = vpop.permute.xlu0 %1419  ;;  %v3966_v36 = vpop.permute.xlu1 %1038  ;;  %v1565_v53 = vsel %vm1545_vm5, %v1532_v60, %v3642_v0 }
 0x19f   : > { %v1729_v13 = vsel %vm1710_vm10, %v1696_v43, %v1420_v33 }
 0x1a0   : > { %1113 = vrot.lane.b32.xlu0 %v4817_v44, %s2684_s8  ;;  %1145 = vrot.lane.b32.xlu1 %v4818_v28, %s2684_s8  ;;  %v1582_v44 = vsel %vm1578_vm6, %v1549_v55, %v3776_v22  ;;  %v1598_v28 = vsel %vm1578_vm6, %v1565_v53, %v3872_v24  ;;  %v1599_v53 = vsel %vm1578_vm6, %v3659_v58, %v3939_v17 }
 0x1a1   : > { %2572 = vmatprep.mubr.msk.f32.mxu1 %vm1754_vm11, %v1729_v13  ;;  %v1615_v3 = vsel %vm1611_vm7, %v1582_v44, %v1100_v52  ;;  %v1631_v14 = vsel %vm1611_vm7, %v1598_v28, %v1132_v21  ;;  %v4830_v44 = vld [vmem:[#allocation37_spill] sm:$0xff] }
 0x1a2   : > { %v1102_v30 = vpop.permute.xlu0 %1101  ;;  %v1134_v37 = vpop.permute.xlu1 %1133  ;;  %v1648_v0 = vsel %vm1644_vm8, %v1615_v3, %v1197_v45  ;;  %v1664_v2 = vsel %vm1644_vm8, %v1631_v14, %v1229_v26 }
 0x1a3   : > { %v1681_v43 = vsel %vm1677_vm9, %v1648_v0, %v1293_v50  ;;  %v1697_v22 = vsel %vm1677_vm9, %v1664_v2, %v1325_v48  ;;  %v1600_v0 = vsel %vm1578_vm6, %v3662_v35, %v3966_v36 }
 0x1a4   : > { %1401 = vrot.lane.b32.xlu0 %v4827_v18, %s2687_s27  ;;  %1433 = vrot.lane.b32.xlu1 %v4828_v11, %s2687_s27 }
 0x1a6   : > { %v1390_v33 = vpop.permute.xlu0 %1389  ;;  %v1422_v24 = vpop.permute.xlu1 %1421 }
 0x1a7   : > { %v1714_v52 = vsel %vm1710_vm10, %v1681_v43, %v1390_v33  ;;  %v1730_v21 = vsel %vm1710_vm10, %v1697_v22, %v1422_v24 }
 0x1a8   : > { %1115 = vrot.lane.b32.xlu0 %v4827_v18, %s2684_s8  ;;  %1147 = vrot.lane.b32.xlu1 %v4828_v11, %s2684_s8  ;;  %v1584_v11 = vsel %vm1578_vm6, %v3526_v7, %v3784_v38 }
 0x1a9   : > { %2549 = vmatmul.mubr.msk.f32.gmra.mrb[2].mxu0 %vm1754_vm11, %v1714_v52  ;;  %2573 = vmatmul.mubr.msk.f32.gmra.mrb[2].mxu1 %vm1754_vm11, %v1730_v21  ;;  %v4831_v21 = vld [vmem:[#allocation19_spill] sm:$0xff] }
 0x1aa   : > { %v1104_v45 = vpop.permute.xlu0 %1103  ;;  %v1136_v26 = vpop.permute.xlu1 %1135 }
 0x1ab   : > { %v1617_v2 = vsel %vm1611_vm7, %v1584_v11, %v1104_v45  ;;  %v1633_v43 = vsel %vm1611_vm7, %v1600_v0, %v1136_v26  ;;  %v4832_v45 = vld [vmem:[#allocation36_spill] sm:$0xff]  ;;  %v1586_v0 = vsel %vm1578_vm6, %v3546_v46, %v3792_v5 }
 0x1ac   : > { %1210 = vrot.lane.b32.xlu0 %v3222_v51, %s2685_s9  ;;  %1242 = vrot.lane.b32.xlu1 %v4777_v41, %s2685_s9 }
 0x1ae   : > { %v1199_v50 = vpop.permute.xlu0 %1198  ;;  %v1231_v48 = vpop.permute.xlu1 %1230 }
 0x1b0   : > { %1212 = vrot.lane.b32.xlu0 %v4750_v1, %s2685_s9  ;;  %1244 = vrot.lane.b32.xlu1 %v4779_v31, %s2685_s9  ;;  %v1583_v31 = vsel %vm1578_vm6, %v3523_v57, %v3782_v10  ;;  %v1632_v10 = vsel %vm1611_vm7, %v1599_v53, %v1134_v37 }
 0x1b1   : > { %v1616_v62 = vsel %vm1611_vm7, %v1583_v31, %v1102_v30  ;;  %v4829_v30 = vld [vmem:[#allocation20_spill] sm:$0xff]  ;;  %v1665_v28 = vsel %vm1644_vm8, %v1632_v10, %v1231_v48 }
 0x1b2   : > { %v1201_v13 = vpop.permute.xlu0 %1200  ;;  %v1233_v8 = vpop.permute.xlu1 %1232  ;;  %v1649_v42 = vsel %vm1644_vm8, %v1616_v62, %v1199_v50  ;;  %v2651_v31 = vld [vmem:[%s2746_s25 + $0x70] sm:$0xff] }
 0x1b3   : > { %v1650_v22 = vsel %vm1644_vm8, %v1617_v2, %v1201_v13  ;;  %v1666_v33 = vsel %vm1644_vm8, %v1633_v43, %v1233_v8  ;;  %v4833_v8 = vld [vmem:[#allocation75_spill] sm:$0xff]  ;;  %v4835_v62 = vld [vmem:[#allocation68_spill] sm:$0xff] }
 0x1b4   : > { %1306 = vrot.lane.b32.xlu0 %v2647_v20, %s2686_s14  ;;  %1338 = vrot.lane.b32.xlu1 %v2648_v27, %s2686_s14 }
 0x1b6   : > { %v1295_v51 = vpop.permute.xlu0 %1294  ;;  %v1327_v41 = vpop.permute.xlu1 %1326 }
 0x1b7   : > { %v1682_v60 = vsel %vm1677_vm9, %v1649_v42, %v1295_v51  ;;  %v1698_v3 = vsel %vm1677_vm9, %v1665_v28, %v1327_v41  ;;  %v4834_v51 = vld [vmem:[#allocation76_spill] sm:$0xff] }
 0x1b8   : > { %1020 = vrot.lane.b32.xlu0 %v2647_v20, %s2683_s7  ;;  %1052 = vrot.lane.b32.xlu1 %v2648_v27, %s2683_s7 }
 0x1ba   : > { %v4024_v1 = vpop.permute.xlu0 %1040  ;;  %v1297_v56 = vpop.permute.xlu1 %1296 }
 0x1bb   : > { %v1683_v7 = vsel %vm1677_vm9, %v1650_v22, %v1297_v56 }
 0x1bc   : > { %1308 = vrot.lane.b32.xlu0 %v2649_v49, %s2686_s14  ;;  %1340 = vrot.lane.b32.xlu1 %v2650_v15, %s2686_s14 }
 0x1be   : > { %v1329_v34 = vpop.permute.xlu0 %1328  ;;  %v1392_v55 = vpop.permute.xlu1 %1391 }
 0x1bf   : > { %v1715_v57 = vsel %vm1710_vm10, %v1682_v60, %v1392_v55  ;;  %v1699_v38 = vsel %vm1677_vm9, %v1666_v33, %v1329_v34  ;;  %v633_v60 = vrot.slane %v4835_v62, 1  ;;  %v4836_v34 = vld [vmem:[#allocation69_spill] sm:$0xff] }
 0x1c0   : > { %1403 = vrot.lane.b32.xlu0 %v4829_v30, %s2687_s27  ;;  %1435 = vrot.lane.b32.xlu1 %v4830_v44, %s2687_s27  ;;  %v634_v55 = vrot.slane %v4836_v34, 1  ;;  %v2653_v33 = vld [vmem:[%s2746_s25 + $0xf8] sm:$0xff] }
 0x1c1   : > { %2551 = vmatprep.mubr.msk.f32.mxu0 %vm1754_vm11, %v1715_v57 }
 0x1c2   : > { %v1424_v14 = vpop.permute.xlu0 %1423  ;;  %v4048_v18 = vpop.permute.xlu1 %1042 }
 0x1c3   : > { %v1731_v58 = vsel %vm1710_vm10, %v1698_v3, %v1424_v14  ;;  %v635_v3 = vsel %vm584_vm1, %v633_v60, %v634_v55  ;;  %v1602_v2 = vsel %vm1578_vm6, %v3682_v4, %v4048_v18  ;;  %v2654_v60 = vld [vmem:[%s2746_s25 + $0x80] sm:$0xff] }
 0x1c4   : > { %1022 = vrot.lane.b32.xlu0 %v2649_v49, %s2683_s7  ;;  %1054 = vrot.lane.b32.xlu1 %v2650_v15, %s2683_s7  ;;  %v1585_v15 = vsel %vm1578_vm6, %v3543_v25, %v3790_v19  ;;  %v1601_v25 = vsel %vm1578_vm6, %v3679_v39, %v4024_v1 }
 0x1c5   : > { %2575 = vmatprep.mubr.msk.f32.mxu1 %vm1754_vm11, %v1731_v58 }
 0x1c6   : > { %v1106_v17 = vpop.permute.xlu0 %1105  ;;  %v1138_v37 = vpop.permute.xlu1 %1137 }
 0x1c8   : > { %1117 = vrot.lane.b32.xlu0 %v4829_v30, %s2684_s8  ;;  %1149 = vrot.lane.b32.xlu1 %v4830_v44, %s2684_s8  ;;  %v1634_v30 = vsel %vm1611_vm7, %v1601_v25, %v1138_v37  ;;  %v2652_v44 = vld [vmem:[%s2746_s25 + $0x78] sm:$0xff] }
 0x1ca   : > { %v1394_v24 = vpop.permute.xlu0 %1393  ;;  %v1426_v35 = vpop.permute.xlu1 %1425 }
 0x1cb   : > { %v1716_v36 = vsel %vm1710_vm10, %v1683_v7, %v1394_v24  ;;  %v1732_v52 = vsel %vm1710_vm10, %v1699_v38, %v1426_v35  ;;  %v401_v24 = vld [vmem:[%s377_s6] sm:$0xff] }
 0x1cc   : > { %1405 = vrot.lane.b32.xlu0 %v4831_v21, %s2687_s27  ;;  %1437 = vrot.lane.b32.xlu1 %v4832_v45, %s2687_s27 }
 0x1cd   : > { %2552 = vmatmul.mubr.msk.f32.gmra.mrb[4].mxu0 %vm1754_vm11, %v1716_v36  ;;  %2576 = vmatmul.mubr.msk.f32.gmra.mrb[4].mxu1 %vm1754_vm11, %v1732_v52  ;;  %v673_v52 = vsel %vm584_vm1, %v634_v55, 0.0 }
 0x1ce   : > { %v1108_v26 = vpop.permute.xlu0 %1107  ;;  %v1140_v50 = vpop.permute.xlu1 %1139 }
 0x1cf   : > { %v1619_v43 = vsel %vm1611_vm7, %v1586_v0, %v1108_v26  ;;  %v1635_v22 = vsel %vm1611_vm7, %v1602_v2, %v1140_v50  ;;  %v402_v50 = vld [vmem:[%s377_s6 + $0x8] sm:$0xff] }
 0x1d0   : > { %1119 = vrot.lane.b32.xlu0 %v4831_v21, %s2684_s8  ;;  %1151 = vrot.lane.b32.xlu1 %v4832_v45, %s2684_s8  ;;  %v407_v21 = vmul.f32 0.0, %v401_v24 }
 0x1d2   : > { %v1203_v48 = vpop.permute.xlu0 %1202  ;;  %v1235_v13 = vpop.permute.xlu1 %1234 }
 0x1d3   : > { %v1667_v28 = vsel %vm1644_vm8, %v1634_v30, %v1235_v13  ;;  %v529_v13 = vrot.slane %v407_v21, 7 }
 0x1d4   : > { %1214 = vrot.lane.b32.xlu0 %v4799_v61, %s2685_s9  ;;  %1246 = vrot.lane.b32.xlu1 %v4833_v8, %s2685_s9  ;;  %v408_v8 = vmul.f32 0.0, %v402_v50 }
 0x1d6   : > { %v1205_v20 = vpop.permute.xlu0 %1204  ;;  %v1237_v27 = vpop.permute.xlu1 %1236 }
 0x1d7   : > { %v1652_v7 = vsel %vm1644_vm8, %v1619_v43, %v1205_v20  ;;  %v1668_v46 = vsel %vm1644_vm8, %v1635_v22, %v1237_v27  ;;  %v1588_v43 = vsel %vm1578_vm6, %v3566_v54, %v3800_v29 }
 0x1d8   : > { %1216 = vrot.lane.b32.xlu0 %v4805_v63, %s2685_s9  ;;  %1248 = vrot.lane.b32.xlu1 %v4834_v51, %s2685_s9  ;;  %v1618_v63 = vsel %vm1611_vm7, %v1585_v15, %v1106_v17  ;;  %v4837_v17 = vld [vmem:[#allocation22_spill] sm:$0xff]  ;;  %v583_v51 = vsel %vm477_vm0, 0.0, %v529_v13 }
 0x1d9   : > { %v1651_v42 = vsel %vm1644_vm8, %v1618_v63, %v1203_v48  ;;  %v4838_v48 = vld [vmem:[#allocation21_spill] sm:$0xff] }
 0x1da   : > { %v1299_v41 = vpop.permute.xlu0 %1298  ;;  %v1331_v56 = vpop.permute.xlu1 %1330 }
 0x1db   : > { %v1684_v53 = vsel %vm1677_vm9, %v1651_v42, %v1299_v41  ;;  %v1700_v14 = vsel %vm1677_vm9, %v1667_v28, %v1331_v56  ;;  %v530_v41 = vrot.slane %v408_v8, 7 }
 0x1dc   : > { %1310 = vrot.lane.b32.xlu0 %v2651_v31, %s2686_s14  ;;  %1342 = vrot.lane.b32.xlu1 %v4835_v62, %s2686_s14 }
 0x1de   : > { %v4094_v61 = vpop.permute.xlu0 %1044  ;;  %v1301_v49 = vpop.permute.xlu1 %1300 }
 0x1df   : > { %v1685_v5 = vsel %vm1677_vm9, %v1652_v7, %v1301_v49 }
 0x1e0   : > { %1024 = vrot.lane.b32.xlu0 %v2651_v31, %s2683_s7  ;;  %1056 = vrot.lane.b32.xlu1 %v4835_v62, %s2683_s7  ;;  %v531_v62 = vsel %vm477_vm0, %v529_v13, %v530_v41 }
 0x1e2   : > { %v1333_v57 = vpop.permute.xlu0 %1332  ;;  %v1396_v10 = vpop.permute.xlu1 %1395 }
 0x1e3   : > { %v1717_v19 = vsel %vm1710_vm10, %v1684_v53, %v1396_v10  ;;  %v1701_v4 = vsel %vm1677_vm9, %v1668_v46, %v1333_v57  ;;  %v1587_v57 = vsel %vm1578_vm6, %v3563_v47, %v3798_v23 }
 0x1e4   : > { %1312 = vrot.lane.b32.xlu0 %v2652_v44, %s2686_s14  ;;  %1344 = vrot.lane.b32.xlu1 %v4836_v34, %s2686_s14  ;;  %v637_v34 = vrot.slane %v408_v8, 1 }
 0x1e5   : > { %2554 = vmatprep.mubr.msk.f32.mxu0 %vm1754_vm11, %v1717_v19  ;;  %v2655_v19 = vld [vmem:[%s2746_s25 + $0x88] sm:$0xff] }
 0x1e6   : > { %v1428_v39 = vpop.permute.xlu0 %1427  ;;  %v4120_v1 = vpop.permute.xlu1 %1046 }
 0x1e7   : > { %v1733_v58 = vsel %vm1710_vm10, %v1700_v14, %v1428_v39  ;;  %v4839_v39 = vld [vmem:[#allocation24_spill] sm:$0xff]  ;;  %v1604_v22 = vsel %vm1578_vm6, %v3702_v9, %v4120_v1 }
 0x1e8   : > { %1407 = vrot.lane.b32.xlu0 %v4837_v17, %s2687_s27  ;;  %1439 = vrot.lane.b32.xlu1 %v635_v3, %s2687_s27 }
 0x1e9   : > { %2578 = vmatprep.mubr.msk.f32.mxu1 %vm1754_vm11, %v1733_v58  ;;  %v674_v58 = vsel %vm584_vm1, %v637_v34, 0.0 }
 0x1ea   : > { %v1110_v37 = vpop.permute.xlu0 %1109  ;;  %v1142_v11 = vpop.permute.xlu1 %1141 }
 0x1eb   : > { %v1620_v10 = vsel %vm1611_vm7, %v1587_v57, %v1110_v37 }
 0x1ec   : > { %1026 = vrot.lane.b32.xlu0 %v2652_v44, %s2683_s7  ;;  %1058 = vrot.lane.b32.xlu1 %v2653_v33, %s2683_s7 }
 0x1ee   : > { %v1398_v18 = vpop.permute.xlu0 %1397  ;;  %v1430_v38 = vpop.permute.xlu1 %1429 }
 0x1ef   : > { %v1718_v35 = vsel %vm1710_vm10, %v1685_v5, %v1398_v18  ;;  %v1734_v36 = vsel %vm1710_vm10, %v1701_v4, %v1430_v38 }
 0x1f0   : > { %1121 = vrot.lane.b32.xlu0 %v4837_v17, %s2684_s8  ;;  %1153 = vrot.lane.b32.xlu1 %v635_v3, %s2684_s8 }
 0x1f1   : > { %2555 = vmatmul.mubr.msk.f32.gmra.mrb[6].mxu0 %vm1754_vm11, %v1718_v35  ;;  %2579 = vmatmul.mubr.msk.f32.gmra.mrb[6].mxu1 %vm1754_vm11, %v1734_v36 }
 0x1f2   : > { %v1112_v45 = vpop.permute.xlu0 %1111  ;;  %v1144_v26 = vpop.permute.xlu1 %1143 }
 0x1f3   : > { %v1621_v33 = vsel %vm1611_vm7, %v1588_v43, %v1112_v45  ;;  %v1637_v7 = vsel %vm1611_vm7, %v1604_v22, %v1144_v26  ;;  %v4260_v22 = vld [vmem:[%s4572_s4] ss:$0 sm:$0xff] }
 0x1f4   : > { %1409 = vrot.lane.b32.xlu0 %v4838_v48, %s2687_s27  ;;  %1441 = vrot.lane.b32.xlu1 %v673_v52, %s2687_s27 }
 0x1f6   : > { %v1207_v20 = vpop.permute.xlu0 %1206  ;;  %v1239_v27 = vpop.permute.xlu1 %1238 }
 0x1f7   : > { %v1653_v30 = vsel %vm1644_vm8, %v1620_v10, %v1207_v20 }
 0x1f8   : > { %1123 = vrot.lane.b32.xlu0 %v4838_v48, %s2684_s8  ;;  %1155 = vrot.lane.b32.xlu1 %v673_v52, %s2684_s8 }
 0x1fa   : > { %v1209_v56 = vpop.permute.xlu0 %1208  ;;  %v1241_v31 = vpop.permute.xlu1 %1240 }
 0x1fb   : > { %v1654_v46 = vsel %vm1644_vm8, %v1621_v33, %v1209_v56  ;;  %v1670_v5 = vsel %vm1644_vm8, %v1637_v7, %v1241_v31  ;;  %v4842_v33 = vld [vmem:[#allocation86_spill] sm:$0xff] }
 0x1fc   : > { %1218 = vrot.lane.b32.xlu0 %v4816_v40, %s2685_s9  ;;  %1250 = vrot.lane.b32.xlu1 %v583_v51, %s2685_s9  ;;  %v636_v40 = vrot.slane %v407_v21, 1 }
 0x1fe   : > { %v1303_v49 = vpop.permute.xlu0 %1302  ;;  %v1335_v15 = vpop.permute.xlu1 %1334  ;;  %v638_v28 = vsel %vm584_vm1, %v636_v40, %v637_v34 }
 0x1ff   : > { %v1686_v47 = vsel %vm1677_vm9, %v1653_v30, %v1303_v49 }
 0x200   : > { %1220 = vrot.lane.b32.xlu0 %v4823_v32, %s2685_s9  ;;  %1252 = vrot.lane.b32.xlu1 %v531_v62, %s2685_s9  ;;  %v1603_v32 = vsel %vm1578_vm6, %v3699_v6, %v4094_v61 }
 0x201   : > { %v1636_v25 = vsel %vm1611_vm7, %v1603_v32, %v1142_v11  ;;  %v4840_v11 = vld [vmem:[#allocation23_spill] sm:$0xff] }
 0x202   : > { %v4168_v63 = vpop.permute.xlu0 %1016  ;;  %v4170_v42 = vpop.permute.xlu1 %1048  ;;  %v1669_v44 = vsel %vm1644_vm8, %v1636_v25, %v1239_v27 }
 0x203   : > { %v1702_v23 = vsel %vm1677_vm9, %v1669_v44, %v1335_v15  ;;  %v1589_v20 = vsel %vm1578_vm6, %v3583_v59, %v4168_v63  ;;  %v1605_v27 = vsel %vm1578_vm6, %v3719_v12, %v4170_v42 }
 0x204   : > { %1314 = vrot.lane.b32.xlu0 %v2654_v60, %s2686_s14  ;;  %1346 = vrot.lane.b32.xlu1 %v407_v21, %s2686_s14 }
 0x206   : > { %v1305_v55 = vpop.permute.xlu0 %1304  ;;  %v1337_v53 = vpop.permute.xlu1 %1336 }
 0x207   : > { %v1687_v4 = vsel %vm1677_vm9, %v1654_v46, %v1305_v55  ;;  %v1703_v18 = vsel %vm1677_vm9, %v1670_v5, %v1337_v53  ;;  %v4841_v53 = vld [vmem:[#allocation6_spill] sm:$0xff]  ;;  %v4843_v46 = vld [vmem:[#allocation12_spill] sm:$0xff] }
 0x208   : > { %1316 = vrot.lane.b32.xlu0 %v2655_v19, %s2686_s14  ;;  %1348 = vrot.lane.b32.xlu1 %v408_v8, %s2686_s14 }
 0x20a   : > { %v1400_v6 = vpop.permute.xlu0 %1399  ;;  %v1432_v61 = vpop.permute.xlu1 %1431 }
 0x20b   : > { %v1719_v3 = vsel %vm1710_vm10, %v1686_v47, %v1400_v6  ;;  %v1735_v14 = vsel %vm1710_vm10, %v1702_v23, %v1432_v61 }
 0x20c   : > { %1411 = vrot.lane.b32.xlu0 %v4839_v39, %s2687_s27  ;;  %1443 = vrot.lane.b32.xlu1 %v638_v28, %s2687_s27 }
 0x20d   : > { %2557 = vmatprep.mubr.msk.f32.mxu0 %vm1754_vm11, %v1719_v3  ;;  %2581 = vmatprep.mubr.msk.f32.mxu1 %vm1754_vm11, %v1735_v14 }
 0x20e   : > { %v1019_v17 = vpop.permute.xlu0 %1018  ;;  %v1051_v37 = vpop.permute.xlu1 %1050 }
 0x20f   : > { %v1590_v55 = vsel %vm1578_vm6, %v3586_v16, %v1019_v17  ;;  %v1606_v57 = vsel %vm1578_vm6, %v4841_v53, %v1051_v37 }
 0x210   : > { %1413 = vrot.lane.b32.xlu0 %v4840_v11, %s2687_s27  ;;  %1445 = vrot.lane.b32.xlu1 %v674_v58, %s2687_s27 }
 0x212   : > { %v1114_v0 = vpop.permute.xlu0 %1113  ;;  %v1146_v2 = vpop.permute.xlu1 %1145 }
 0x213   : > { %v1622_v51 = vsel %vm1611_vm7, %v1589_v20, %v1114_v0  ;;  %v1638_v41 = vsel %vm1611_vm7, %v1605_v27, %v1146_v2 }
 0x216   : > { %v1402_v38 = vpop.permute.xlu0 %1401  ;;  %v1434_v24 = vpop.permute.xlu1 %1433 }
 0x217   : > { %v1720_v54 = vsel %vm1710_vm10, %v1687_v4, %v1402_v38  ;;  %v1736_v29 = vsel %vm1710_vm10, %v1703_v18, %v1434_v24 }
 0x218   : > { %2558 = vmatmul.mubr.msk.f32.gmra.mrb[8].mxu0 %vm1754_vm11, %v1720_v54  ;;  %2582 = vmatmul.mubr.msk.f32.gmra.mrb[8].mxu1 %vm1754_vm11, %v1736_v29 }
 0x21a   : > { %v1116_v9 = vpop.permute.xlu0 %1115  ;;  %v1148_v1 = vpop.permute.xlu1 %1147 }
 0x21b   : > { %v1623_v32 = vsel %vm1611_vm7, %v1590_v55, %v1116_v9  ;;  %v1639_v10 = vsel %vm1611_vm7, %v1606_v57, %v1148_v1 }
 0x21e   : > { %v1211_v35 = vpop.permute.xlu0 %1210  ;;  %v1243_v36 = vpop.permute.xlu1 %1242 }
 0x21f   : > { %v1655_v56 = vsel %vm1644_vm8, %v1622_v51, %v1211_v35  ;;  %v1671_v31 = vsel %vm1644_vm8, %v1638_v41, %v1243_v36 }
 0x222   : > { %v1213_v52 = vpop.permute.xlu0 %1212  ;;  %v1245_v21 = vpop.permute.xlu1 %1244 }
 0x223   : > { %v1656_v25 = vsel %vm1644_vm8, %v1623_v32, %v1213_v52  ;;  %v1672_v19 = vsel %vm1644_vm8, %v1639_v10, %v1245_v21 }
 0x226   : > { %v1307_v45 = vpop.permute.xlu0 %1306  ;;  %v1339_v26 = vpop.permute.xlu1 %1338 }
 0x227   : > { %v1688_v62 = vsel %vm1677_vm9, %v1655_v56, %v1307_v45  ;;  %v1704_v49 = vsel %vm1677_vm9, %v1671_v31, %v1339_v26  ;;  %v4844_v56 = vld [vmem:[#allocation87_spill] sm:$0xff] }
 0x22a   : > { %v1021_v50 = vpop.permute.xlu0 %1020  ;;  %v1053_v48 = vpop.permute.xlu1 %1052 }
 0x22b   : > { %v1591_v7 = vsel %vm1578_vm6, %v4842_v33, %v1021_v50  ;;  %v1607_v5 = vsel %vm1578_vm6, %v4843_v46, %v1053_v48 }
 0x22e   : > { %v1309_v13 = vpop.permute.xlu0 %1308  ;;  %v1341_v8 = vpop.permute.xlu1 %1340 }
 0x22f   : > { %v1689_v30 = vsel %vm1677_vm9, %v1656_v25, %v1309_v13  ;;  %v1705_v44 = vsel %vm1677_vm9, %v1672_v19, %v1341_v8 }
 0x232   : > { %v1404_v15 = vpop.permute.xlu0 %1403  ;;  %v1436_v60 = vpop.permute.xlu1 %1435 }
 0x233   : > { %v1721_v59 = vsel %vm1710_vm10, %v1688_v62, %v1404_v15  ;;  %v1737_v63 = vsel %vm1710_vm10, %v1704_v49, %v1436_v60  ;;  %v4845_v62 = vld [vmem:[#allocation26_spill] sm:$0xff] }
 0x234   : > { %2560 = vmatprep.mubr.msk.f32.mxu0 %vm1754_vm11, %v1721_v59  ;;  %2584 = vmatprep.mubr.msk.f32.mxu1 %vm1754_vm11, %v1737_v63 }
 0x236   : > { %v4234_v12 = vpop.permute.xlu0 %1022  ;;  %v4236_v42 = vpop.permute.xlu1 %1054 }
 0x237   : > { %v1592_v31 = vsel %vm1578_vm6, %v4844_v56, %v4234_v12  ;;  %v1608_v49 = vsel %vm1578_vm6, %v4845_v62, %v4236_v42 }
 0x23a   : > { %v1118_v40 = vpop.permute.xlu0 %1117  ;;  %v1150_v34 = vpop.permute.xlu1 %1149 }
 0x23b   : > { %v1624_v4 = vsel %vm1611_vm7, %v1591_v7, %v1118_v40  ;;  %v1640_v18 = vsel %vm1611_vm7, %v1607_v5, %v1150_v34 }
 0x23e   : > { %v1406_v28 = vpop.permute.xlu0 %1405  ;;  %v1438_v47 = vpop.permute.xlu1 %1437 }
 0x23f   : > { %v1722_v16 = vsel %vm1710_vm10, %v1689_v30, %v1406_v28  ;;  %v1738_v23 = vsel %vm1710_vm10, %v1705_v44, %v1438_v47 }
 0x240   : > { %2561 = vmatmul.mubr.msk.f32.gmra.mrb[10].mxu0 %vm1754_vm11, %v1722_v16  ;;  %2585 = vmatmul.mubr.msk.f32.gmra.mrb[10].mxu1 %vm1754_vm11, %v1738_v23  ;;  %v4846_v23 = vld [vmem:[#allocation41_spill] sm:$0xff] }
 0x242   : > { %v1120_v6 = vpop.permute.xlu0 %1119  ;;  %v1152_v61 = vpop.permute.xlu1 %1151 }
 0x243   : > { %v1625_v15 = vsel %vm1611_vm7, %v1592_v31, %v1120_v6  ;;  %v1641_v60 = vsel %vm1611_vm7, %v1608_v49, %v1152_v61  ;;  %v4847_v61 = vld [vmem:[#allocation48_spill] sm:$0xff] }
 0x246   : > { %v1215_v3 = vpop.permute.xlu0 %1214  ;;  %v1247_v14 = vpop.permute.xlu1 %1246 }
 0x247   : > { %v1657_v54 = vsel %vm1644_vm8, %v1624_v4, %v1215_v3  ;;  %v1673_v29 = vsel %vm1644_vm8, %v1640_v18, %v1247_v14 }
 0x24a   : > { %v1217_v39 = vpop.permute.xlu0 %1216  ;;  %v1249_v58 = vpop.permute.xlu1 %1248 }
 0x24b   : > { %v1658_v59 = vsel %vm1644_vm8, %v1625_v15, %v1217_v39  ;;  %v1674_v63 = vsel %vm1644_vm8, %v1641_v60, %v1249_v58 }
 0x24e   : > { %v1311_v17 = vpop.permute.xlu0 %1310  ;;  %v1343_v37 = vpop.permute.xlu1 %1342 }
 0x24f   : > { %v1690_v52 = vsel %vm1677_vm9, %v1657_v54, %v1311_v17  ;;  %v1706_v21 = vsel %vm1677_vm9, %v1673_v29, %v1343_v37  ;;  %v4849_v29 = vld [vmem:[#allocation49_spill] sm:$0xff] }
 0x252   : > { %v4252_v11 = vpop.permute.xlu0 %1024  ;;  %v4254_v0 = vpop.permute.xlu1 %1056 }
 0x253   : > { %v1593_v6 = vsel %vm1578_vm6, %v4846_v23, %v4252_v11  ;;  %v1609_v3 = vsel %vm1578_vm6, %v4847_v61, %v4254_v0 }
 0x256   : > { %v1313_v2 = vpop.permute.xlu0 %1312  ;;  %v1345_v43 = vpop.permute.xlu1 %1344 }
 0x257   : > { %v1691_v40 = vsel %vm1677_vm9, %v1658_v59, %v1313_v2  ;;  %v1707_v34 = vsel %vm1677_vm9, %v1674_v63, %v1345_v43 }
 0x258   : > { %v2547_v38 = vpop.f32.mrb[0].mxu0  ;;  %v2571_v24 = vpop.f32.mrb[0].mxu1 }
 0x259   : > { %v1927_v9 = vadd.f32 %v2547_v38, %v4260_v22  ;;  %v4277_v1 = vadd.f32 %v2571_v24, %v4260_v22  ;;  %v1921_v35 = vpop.f32.mrb[1].mxu0  ;;  %v2001_v36 = vpop.f32.mrb[1].mxu1  ;;  %v4848_v24 = vld [vmem:[#allocation44_spill] sm:$0xff] }
 0x25a   : > { %v1922_v45 = vadd.f32 %v4260_v22, %v1921_v35  ;;  %v4283_v26 = vadd.f32 %v4260_v22, %v2001_v36  ;;  %v1408_v50 = vpop.permute.xlu0 %1407  ;;  %v1440_v48 = vpop.permute.xlu1 %1439 }
 0x25b   : > { %2081 = vst.msk [vmem:[%s4269_s10 + $0x8] sm:$0xff] %vm1512_vm4, %v1927_v9  ;;  %2097 = vst.msk [vmem:[%s4269_s10 + $0x108] sm:$0xff] %vm1512_vm4, %v4277_v1  ;;  %v1723_v13 = vsel %vm1710_vm10, %v1690_v52, %v1408_v50  ;;  %2146 = vrot.lane.b32.xlu1 %v1927_v9, %s2688_s18  ;;  %v1739_v8 = vsel %vm1710_vm10, %v1706_v21, %v1440_v48 }
 0x25c   : > { %2080 = vst.msk [vmem:[%s4269_s10] sm:$0xff] %vm1512_vm4, %v1922_v45  ;;  %2096 = vst.msk [vmem:[%s4269_s10 + $0x100] sm:$0xff] %vm1512_vm4, %v4283_v26  ;;  %2144 = vrot.lane.b32.xlu0 %v1922_v45, %s2688_s18  ;;  %2563 = vmatprep.mubr.msk.f32.mxu0 %vm1754_vm11, %v1723_v13 }
 0x25d   : > { %2587 = vmatprep.mubr.msk.f32.mxu1 %vm1754_vm11, %v1739_v8 }
 0x25e   : > { %v1027_v20 = vpop.permute.xlu0 %1026  ;;  %v1059_v27 = vpop.permute.xlu1 %1058 }
 0x25f   : > { %v1594_v54 = vsel %vm1578_vm6, %v4848_v24, %v1027_v20  ;;  %v1610_v9 = vsel %vm1578_vm6, %v4849_v29, %v1059_v27 }
 0x262   : > { %v1122_v51 = vpop.permute.xlu0 %1121  ;;  %v1154_v41 = vpop.permute.xlu1 %1153 }
 0x263   : > { %v1626_v14 = vsel %vm1611_vm7, %v1593_v6, %v1122_v51  ;;  %v1642_v39 = vsel %vm1611_vm7, %v1609_v3, %v1154_v41 }
 0x266   : > { %v1410_v55 = vpop.permute.xlu0 %1409  ;;  %v1442_v53 = vpop.permute.xlu1 %1441 }
 0x267   : > { %v1724_v12 = vsel %vm1710_vm10, %v1691_v40, %v1410_v55  ;;  %v1740_v57 = vsel %vm1710_vm10, %v1707_v34, %v1442_v53 }
 0x268   : > { %2564 = vmatmul.mubr.msk.f32.gmra.mrb[12].mxu0 %vm1754_vm11, %v1724_v12  ;;  %2588 = vmatmul.mubr.msk.f32.gmra.mrb[12].mxu1 %vm1754_vm11, %v1740_v57 }
 0x26a   : > { %v1124_v42 = vpop.permute.xlu0 %1123  ;;  %v1156_v32 = vpop.permute.xlu1 %1155 }
 0x26b   : > { %v1627_v52 = vsel %vm1611_vm7, %v1594_v54, %v1124_v42  ;;  %v1643_v21 = vsel %vm1611_vm7, %v1610_v9, %v1156_v32 }
 0x26e   : > { %v1219_v10 = vpop.permute.xlu0 %1218  ;;  %v1251_v25 = vpop.permute.xlu1 %1250 }
 0x26f   : > { %v1659_v37 = vsel %vm1644_vm8, %v1626_v14, %v1219_v10  ;;  %v1675_v2 = vsel %vm1644_vm8, %v1642_v39, %v1251_v25 }
 0x272   : > { %v1221_v19 = vpop.permute.xlu0 %1220  ;;  %v1253_v30 = vpop.permute.xlu1 %1252 }
 0x273   : > { %v1660_v45 = vsel %vm1644_vm8, %v1627_v52, %v1221_v19  ;;  %v1676_v50 = vsel %vm1644_vm8, %v1643_v21, %v1253_v30 }
 0x276   : > { %v1315_v44 = vpop.permute.xlu0 %1314  ;;  %v1347_v28 = vpop.permute.xlu1 %1346 }
 0x277   : > { %v1692_v0 = vsel %vm1677_vm9, %v1659_v37, %v1315_v44  ;;  %v1708_v46 = vsel %vm1677_vm9, %v1675_v2, %v1347_v28 }
 0x27a   : > { %v1317_v47 = vpop.permute.xlu0 %1316  ;;  %v1349_v16 = vpop.permute.xlu1 %1348 }
 0x27b   : > { %v1693_v48 = vsel %vm1677_vm9, %v1660_v45, %v1317_v47  ;;  %v1709_v13 = vsel %vm1677_vm9, %v1676_v50, %v1349_v16 }
 0x27c   : > { %v2550_v58 = vpop.f32.mrb[2].mxu0  ;;  %v2574_v17 = vpop.f32.mrb[2].mxu1 }
 0x27d   : > { %v1937_v43 = vadd.f32 %v2550_v58, %v4260_v22  ;;  %v4329_v11 = vadd.f32 %v2574_v17, %v4260_v22  ;;  %v1931_v33 = vpop.f32.mrb[3].mxu0  ;;  %v2011_v7 = vpop.f32.mrb[3].mxu1 }
 0x27e   : > { %v1932_v5 = vadd.f32 %v4260_v22, %v1931_v33  ;;  %v4335_v4 = vadd.f32 %v4260_v22, %v2011_v7  ;;  %v1412_v18 = vpop.permute.xlu0 %1411  ;;  %v1444_v38 = vpop.permute.xlu1 %1443 }
 0x27f   : > { %2083 = vst.msk [vmem:[%s4269_s10 + $0x28] sm:$0xff] %vm1512_vm4, %v1937_v43  ;;  %2099 = vst.msk [vmem:[%s4269_s10 + $0x128] sm:$0xff] %vm1512_vm4, %v4329_v11  ;;  %v1725_v35 = vsel %vm1710_vm10, %v1692_v0, %v1412_v18  ;;  %v1741_v36 = vsel %vm1710_vm10, %v1708_v46, %v1444_v38  ;;  %2150 = vrot.lane.b32.xlu1 %v1937_v43, %s2688_s18 }
 0x280   : > { %2082 = vst.msk [vmem:[%s4269_s10 + $0x20] sm:$0xff] %vm1512_vm4, %v1932_v5  ;;  %2098 = vst.msk [vmem:[%s4269_s10 + $0x120] sm:$0xff] %vm1512_vm4, %v4335_v4  ;;  %2148 = vrot.lane.b32.xlu0 %v1932_v5, %s2688_s18  ;;  %2566 = vmatprep.mubr.msk.f32.mxu0 %vm1754_vm11, %v1725_v35 }
 0x281   : > { %2590 = vmatprep.mubr.msk.f32.mxu1 %vm1754_vm11, %v1741_v36 }
 0x282   : > { %v1414_v8 = vpop.permute.xlu0 %1413  ;;  %v1446_v20 = vpop.permute.xlu1 %1445 }
 0x283   : > { %v1726_v27 = vsel %vm1710_vm10, %v1693_v48, %v1414_v8  ;;  %v1742_v51 = vsel %vm1710_vm10, %v1709_v13, %v1446_v20 }
 0x284   : > { %2567 = vmatmul.mubr.msk.f32.gmra.mrb[14].mxu0 %vm1754_vm11, %v1726_v27  ;;  %2591 = vmatmul.mubr.msk.f32.gmra.mrb[14].mxu1 %vm1754_vm11, %v1742_v51 }
 0x2a0   : > { %v2553_v41 = vpop.f32.mrb[4].mxu0  ;;  %v2577_v56 = vpop.f32.mrb[4].mxu1 }
 0x2a1   : > { %v1947_v31 = vadd.f32 %v2553_v41, %v4260_v22  ;;  %v4369_v62 = vadd.f32 %v2577_v56, %v4260_v22  ;;  %v1941_v49 = vpop.f32.mrb[5].mxu0  ;;  %v2021_v15 = vpop.f32.mrb[5].mxu1 }
 0x2a2   : > { %v1942_v60 = vadd.f32 %v4260_v22, %v1941_v49  ;;  %v4373_v59 = vadd.f32 %v4260_v22, %v2021_v15 }
 0x2a3   : > { %2085 = vst.msk [vmem:[%s4269_s10 + $0x48] sm:$0xff] %vm1512_vm4, %v1947_v31  ;;  %2101 = vst.msk [vmem:[%s4269_s10 + $0x148] sm:$0xff] %vm1512_vm4, %v4369_v62  ;;  %2154 = vrot.lane.b32.xlu1 %v1947_v31, %s2688_s18 }
 0x2a4   : > { %2084 = vst.msk [vmem:[%s4269_s10 + $0x40] sm:$0xff] %vm1512_vm4, %v1942_v60  ;;  %2100 = vst.msk [vmem:[%s4269_s10 + $0x140] sm:$0xff] %vm1512_vm4, %v4373_v59  ;;  %2152 = vrot.lane.b32.xlu0 %v1942_v60, %s2688_s18 }
 0x2c4   : > { %v2556_v63 = vpop.f32.mrb[6].mxu0  ;;  %v2580_v40 = vpop.f32.mrb[6].mxu1 }
 0x2c5   : > { %v1957_v34 = vadd.f32 %v2556_v63, %v4260_v22  ;;  %v4389_v55 = vadd.f32 %v2580_v40, %v4260_v22  ;;  %v1951_v53 = vpop.f32.mrb[7].mxu0  ;;  %v2031_v12 = vpop.f32.mrb[7].mxu1 }
 0x2c6   : > { %v1952_v57 = vadd.f32 %v4260_v22, %v1951_v53  ;;  %v4393_v42 = vadd.f32 %v4260_v22, %v2031_v12 }
 0x2c7   : > { %2087 = vst.msk [vmem:[%s4269_s10 + $0x68] sm:$0xff] %vm1512_vm4, %v1957_v34  ;;  %2103 = vst.msk [vmem:[%s4269_s10 + $0x168] sm:$0xff] %vm1512_vm4, %v4389_v55  ;;  %2158 = vrot.lane.b32.xlu1 %v1957_v34, %s2688_s18 }
 0x2c8   : > { %2086 = vst.msk [vmem:[%s4269_s10 + $0x60] sm:$0xff] %vm1512_vm4, %v1952_v57  ;;  %2102 = vst.msk [vmem:[%s4269_s10 + $0x160] sm:$0xff] %vm1512_vm4, %v4393_v42  ;;  %2156 = vrot.lane.b32.xlu0 %v1952_v57, %s2688_s18 }
 0x2cd   : > { %v2147_v32 = vpop.permute.xlu1 %2146 }
 0x2ce   : > { %2459 = vst.msk [vmem:[%s4269_s10 + $0x18] sm:$0xff] %vm1512_vm4, %v2147_v32  ;;  %v2145_v10 = vpop.permute.xlu0 %2144 }
 0x2cf   : > { %2458 = vst.msk [vmem:[%s4269_s10 + $0x10] sm:$0xff] %vm1512_vm4, %v2145_v10 }
 0x2eb   : > { %v2559_v25 = vpop.f32.mrb[8].mxu0  ;;  %v2583_v19 = vpop.f32.mrb[8].mxu1 }
 0x2ec   : > { %v1967_v30 = vadd.f32 %v2559_v25, %v4260_v22  ;;  %v4413_v44 = vadd.f32 %v2583_v19, %v4260_v22  ;;  %v1961_v28 = vpop.f32.mrb[9].mxu0  ;;  %v2041_v47 = vpop.f32.mrb[9].mxu1 }
 0x2ed   : > { %v1962_v16 = vadd.f32 %v4260_v22, %v1961_v28  ;;  %v4417_v23 = vadd.f32 %v4260_v22, %v2041_v47 }
 0x2ee   : > { %2089 = vst.msk [vmem:[%s4269_s10 + $0x88] sm:$0xff] %vm1512_vm4, %v1967_v30  ;;  %2105 = vst.msk [vmem:[%s4269_s10 + $0x188] sm:$0xff] %vm1512_vm4, %v4413_v44  ;;  %2162 = vrot.lane.b32.xlu1 %v1967_v30, %s2688_s18 }
 0x2ef   : > { %2088 = vst.msk [vmem:[%s4269_s10 + $0x80] sm:$0xff] %vm1512_vm4, %v1962_v16  ;;  %2104 = vst.msk [vmem:[%s4269_s10 + $0x180] sm:$0xff] %vm1512_vm4, %v4417_v23  ;;  %2160 = vrot.lane.b32.xlu0 %v1962_v16, %s2688_s18 }
 0x2f1   : > { %v2151_v6 = vpop.permute.xlu1 %2150 }
 0x2f2   : > { %2461 = vst.msk [vmem:[%s4269_s10 + $0x38] sm:$0xff] %vm1512_vm4, %v2151_v6  ;;  %v2149_v61 = vpop.permute.xlu0 %2148 }
 0x2f3   : > { %2460 = vst.msk [vmem:[%s4269_s10 + $0x30] sm:$0xff] %vm1512_vm4, %v2149_v61 }
 0x313   : > { %v2562_v3 = vpop.f32.mrb[10].mxu0  ;;  %v2586_v14 = vpop.f32.mrb[10].mxu1 }
 0x314   : > { %v1977_v39 = vadd.f32 %v2562_v3, %v4260_v22  ;;  %v2057_v58 = vadd.f32 %v2586_v14, %v4260_v22  ;;  %v2051_v17 = vpop.f32.mrb[11].mxu1  ;;  %v1971_v37 = vpop.f32.mrb[11].mxu0 }
 0x315   : > { %v2052_v2 = vadd.f32 %v4260_v22, %v2051_v17  ;;  %v2155_v43 = vpop.permute.xlu1 %2154  ;;  %v1972_v33 = vadd.f32 %v4260_v22, %v1971_v37 }
 0x316   : > { %2091 = vst.msk [vmem:[%s4269_s10 + $0xa8] sm:$0xff] %vm1512_vm4, %v1977_v39  ;;  %2107 = vst.msk [vmem:[%s4269_s10 + $0x1a8] sm:$0xff] %vm1512_vm4, %v2057_v58  ;;  %v2153_v7 = vpop.permute.xlu0 %2152  ;;  %2166 = vrot.lane.b32.xlu1 %v1977_v39, %s2688_s18 }
 0x317   : > { %2463 = vst.msk [vmem:[%s4269_s10 + $0x58] sm:$0xff] %vm1512_vm4, %v2155_v43  ;;  %2106 = vst.msk [vmem:[%s4269_s10 + $0x1a0] sm:$0xff] %vm1512_vm4, %v2052_v2  ;;  %2164 = vrot.lane.b32.xlu0 %v1972_v33, %s2688_s18 }
 0x318   : > { %2090 = vst.msk [vmem:[%s4269_s10 + $0xa0] sm:$0xff] %vm1512_vm4, %v1972_v33  ;;  %2462 = vst.msk [vmem:[%s4269_s10 + $0x50] sm:$0xff] %vm1512_vm4, %v2153_v7 }
 0x339   : > { %v2159_v0 = vpop.permute.xlu1 %2158 }
 0x33a   : > { %2465 = vst.msk [vmem:[%s4269_s10 + $0x78] sm:$0xff] %vm1512_vm4, %v2159_v0  ;;  %v2157_v46 = vpop.permute.xlu0 %2156 }
 0x33b   : > { %2464 = vst.msk [vmem:[%s4269_s10 + $0x70] sm:$0xff] %vm1512_vm4, %v2157_v46  ;;  %v2565_v5 = vpop.f32.mrb[12].mxu0  ;;  %v2589_v18 = vpop.f32.mrb[12].mxu1 }
 0x33c   : > { %v1987_v38 = vadd.f32 %v2565_v5, %v4260_v22  ;;  %v2067_v24 = vadd.f32 %v2589_v18, %v4260_v22  ;;  %v1981_v54 = vpop.f32.mrb[13].mxu0  ;;  %v2061_v29 = vpop.f32.mrb[13].mxu1 }
 0x33d   : > { %v1982_v9 = vadd.f32 %v4260_v22, %v1981_v54  ;;  %v2062_v35 = vadd.f32 %v4260_v22, %v2061_v29 }
 0x33e   : > { %2093 = vst.msk [vmem:[%s4269_s10 + $0xc8] sm:$0xff] %vm1512_vm4, %v1987_v38  ;;  %2109 = vst.msk [vmem:[%s4269_s10 + $0x1c8] sm:$0xff] %vm1512_vm4, %v2067_v24  ;;  %2170 = vrot.lane.b32.xlu1 %v1987_v38, %s2688_s18 }
 0x33f   : > { %2092 = vst.msk [vmem:[%s4269_s10 + $0xc0] sm:$0xff] %vm1512_vm4, %v1982_v9  ;;  %2108 = vst.msk [vmem:[%s4269_s10 + $0x1c0] sm:$0xff] %vm1512_vm4, %v2062_v35  ;;  %2168 = vrot.lane.b32.xlu0 %v1982_v9, %s2688_s18 }
 0x357   : > { %v2568_v36 = vpop.f32.mrb[14].mxu0  ;;  %v2592_v52 = vpop.f32.mrb[14].mxu1 }
 0x358   : > { %v1997_v21 = vadd.f32 %v2568_v36, %v4260_v22  ;;  %v2077_v45 = vadd.f32 %v2592_v52, %v4260_v22  ;;  %v1991_v50 = vpop.f32.mrb[15].mxu0  ;;  %v2071_v48 = vpop.f32.mrb[15].mxu1 }
 0x359   : > { %v1992_v13 = vadd.f32 %v4260_v22, %v1991_v50  ;;  %v2072_v8 = vadd.f32 %v4260_v22, %v2071_v48 }
 0x35a   : > { %2095 = vst.msk [vmem:[%s4269_s10 + $0xe8] sm:$0xff] %vm1512_vm4, %v1997_v21  ;;  %2111 = vst.msk [vmem:[%s4269_s10 + $0x1e8] sm:$0xff] %vm1512_vm4, %v2077_v45  ;;  %2174 = vrot.lane.b32.xlu1 %v1997_v21, %s2688_s18 }
 0x35b   : > { %2094 = vst.msk [vmem:[%s4269_s10 + $0xe0] sm:$0xff] %vm1512_vm4, %v1992_v13  ;;  %2110 = vst.msk [vmem:[%s4269_s10 + $0x1e0] sm:$0xff] %vm1512_vm4, %v2072_v8  ;;  %2172 = vrot.lane.b32.xlu0 %v1992_v13, %s2688_s18 }
 0x35e   : > { %2178 = vrot.lane.b32.xlu1 %v4277_v1, %s2688_s18 }
 0x35f   : > { %2176 = vrot.lane.b32.xlu0 %v4283_v26, %s2688_s18 }
 0x360   : > { %v2163_v20 = vpop.permute.xlu1 %2162 }
 0x361   : > { %2467 = vst.msk [vmem:[%s4269_s10 + $0x98] sm:$0xff] %vm1512_vm4, %v2163_v20  ;;  %v2161_v22 = vpop.permute.xlu0 %2160 }
 0x362   : > { %2466 = vst.msk [vmem:[%s4269_s10 + $0x90] sm:$0xff] %vm1512_vm4, %v2161_v22  ;;  %2182 = vrot.lane.b32.xlu1 %v4329_v11, %s2688_s18 }
 0x363   : > { %2180 = vrot.lane.b32.xlu0 %v4335_v4, %s2688_s18 }
 0x366   : > { %2186 = vrot.lane.b32.xlu1 %v4369_v62, %s2688_s18 }
 0x367   : > { %2184 = vrot.lane.b32.xlu0 %v4373_v59, %s2688_s18 }
 0x36a   : > { %2190 = vrot.lane.b32.xlu1 %v4389_v55, %s2688_s18 }
 0x36b   : > { %2188 = vrot.lane.b32.xlu0 %v4393_v42, %s2688_s18 }
 0x36e   : > { %2194 = vrot.lane.b32.xlu1 %v4413_v44, %s2688_s18 }
 0x36f   : > { %2192 = vrot.lane.b32.xlu0 %v4417_v23, %s2688_s18 }
 0x372   : > { %2198 = vrot.lane.b32.xlu1 %v2057_v58, %s2688_s18 }
 0x373   : > { %2196 = vrot.lane.b32.xlu0 %v2052_v2, %s2688_s18 }
 0x376   : > { %2202 = vrot.lane.b32.xlu1 %v2067_v24, %s2688_s18 }
 0x377   : > { %2200 = vrot.lane.b32.xlu0 %v2062_v35, %s2688_s18 }
 0x37a   : > { %2206 = vrot.lane.b32.xlu1 %v2077_v45, %s2688_s18 }
 0x37b   : > { %2204 = vrot.lane.b32.xlu0 %v2072_v8, %s2688_s18 }
 0x388   : > { %v2167_v1 = vpop.permute.xlu1 %2166 }
 0x389   : > { %2469 = vst.msk [vmem:[%s4269_s10 + $0xb8] sm:$0xff] %vm1512_vm4, %v2167_v1  ;;  %v2165_v26 = vpop.permute.xlu0 %2164 }
 0x38a   : > { %2468 = vst.msk [vmem:[%s4269_s10 + $0xb0] sm:$0xff] %vm1512_vm4, %v2165_v26 }
 0x3b0   : > { %v2171_v11 = vpop.permute.xlu1 %2170 }
 0x3b1   : > { %2471 = vst.msk [vmem:[%s4269_s10 + $0xd8] sm:$0xff] %vm1512_vm4, %v2171_v11  ;;  %v2169_v4 = vpop.permute.xlu0 %2168 }
 0x3b2   : > { %2470 = vst.msk [vmem:[%s4269_s10 + $0xd0] sm:$0xff] %vm1512_vm4, %v2169_v4 }
 0x3cc   : > { %v2175_v27 = vpop.permute.xlu1 %2174 }
 0x3cd   : > { %2473 = vst.msk [vmem:[%s4269_s10 + $0xf8] sm:$0xff] %vm1512_vm4, %v2175_v27  ;;  %v2173_v51 = vpop.permute.xlu0 %2172 }
 0x3ce   : > { %2472 = vst.msk [vmem:[%s4269_s10 + $0xf0] sm:$0xff] %vm1512_vm4, %v2173_v51 }
 0x3d0   : > { %v2179_v41 = vpop.permute.xlu1 %2178 }
 0x3d1   : > { %2475 = vst.msk [vmem:[%s4269_s10 + $0x118] sm:$0xff] %vm1512_vm4, %v2179_v41  ;;  %v2177_v56 = vpop.permute.xlu0 %2176 }
 0x3d2   : > { %2474 = vst.msk [vmem:[%s4269_s10 + $0x110] sm:$0xff] %vm1512_vm4, %v2177_v56 }
 0x3d4   : > { %v2183_v31 = vpop.permute.xlu1 %2182 }
 0x3d5   : > { %2477 = vst.msk [vmem:[%s4269_s10 + $0x138] sm:$0xff] %vm1512_vm4, %v2183_v31  ;;  %v2181_v62 = vpop.permute.xlu0 %2180 }
 0x3d6   : > { %2476 = vst.msk [vmem:[%s4269_s10 + $0x130] sm:$0xff] %vm1512_vm4, %v2181_v62 }
 0x3d8   : > { %v2187_v49 = vpop.permute.xlu1 %2186 }
 0x3d9   : > { %2479 = vst.msk [vmem:[%s4269_s10 + $0x158] sm:$0xff] %vm1512_vm4, %v2187_v49  ;;  %v2185_v15 = vpop.permute.xlu0 %2184 }
 0x3da   : > { %2478 = vst.msk [vmem:[%s4269_s10 + $0x150] sm:$0xff] %vm1512_vm4, %v2185_v15 }
 0x3dc   : > { %v2191_v60 = vpop.permute.xlu1 %2190 }
 0x3dd   : > { %2481 = vst.msk [vmem:[%s4269_s10 + $0x178] sm:$0xff] %vm1512_vm4, %v2191_v60  ;;  %v2189_v59 = vpop.permute.xlu0 %2188 }
 0x3de   : > { %2480 = vst.msk [vmem:[%s4269_s10 + $0x170] sm:$0xff] %vm1512_vm4, %v2189_v59 }
 0x3e0   : > { %v2195_v63 = vpop.permute.xlu1 %2194 }
 0x3e1   : > { %2483 = vst.msk [vmem:[%s4269_s10 + $0x198] sm:$0xff] %vm1512_vm4, %v2195_v63  ;;  %v2193_v40 = vpop.permute.xlu0 %2192 }
 0x3e2   : > { %2482 = vst.msk [vmem:[%s4269_s10 + $0x190] sm:$0xff] %vm1512_vm4, %v2193_v40 }
 0x3e4   : > { %v2199_v34 = vpop.permute.xlu1 %2198 }
 0x3e5   : > { %2485 = vst.msk [vmem:[%s4269_s10 + $0x1b8] sm:$0xff] %vm1512_vm4, %v2199_v34  ;;  %v2197_v55 = vpop.permute.xlu0 %2196 }
 0x3e6   : > { %2484 = vst.msk [vmem:[%s4269_s10 + $0x1b0] sm:$0xff] %vm1512_vm4, %v2197_v55 }
 0x3e8   : > { %v2203_v53 = vpop.permute.xlu1 %2202 }
 0x3e9   : > { %2487 = vst.msk [vmem:[%s4269_s10 + $0x1d8] sm:$0xff] %vm1512_vm4, %v2203_v53  ;;  %v2201_v12 = vpop.permute.xlu0 %2200 }
 0x3ea   : > { %2486 = vst.msk [vmem:[%s4269_s10 + $0x1d0] sm:$0xff] %vm1512_vm4, %v2201_v12 }
 0x3ec   : > { %v2207_v57 = vpop.permute.xlu1 %2206 }
 0x3ed   : > { %2489 = vst.msk [vmem:[%s4269_s10 + $0x1f8] sm:$0xff] %vm1512_vm4, %v2207_v57  ;;  %v2205_v42 = vpop.permute.xlu0 %2204 }
 0x3ee   : > { %2488 = vst.msk [vmem:[%s4269_s10 + $0x1f0] sm:$0xff] %vm1512_vm4, %v2205_v42 }
 0x3ef PF: > { %s15_s20 = sadd.s32 1, %s2678_s20   ;;  %s4850_s18 = smov %s2674_s19 }
 0x3f0   : > { %p12_p5 = scmp.ge.s32.totalorder %s15_s20, 4   ;;  %s4851_s19 = smov %s4853_s21 }
 0x3f2   :  { %14 = sbr.rel (!%p12_p5) target bundleno = 2 (0x2), region = 77 }

</bundles_post_ra>
